<compile_context>
chip_gen: v5e
topology: v5e:2x2
jax: 0.10.0
libtpu: 0.0.40
codegen_flags: <defaults>
</compile_context>

<pallas_src>
import functools
import math

import jax
import jax.numpy as jnp
from jax.experimental import pallas as pl
from jax.experimental.pallas import tpu as pltpu


# ----------------------------------------------------------------------------
# Fused transformer-encoder-layer kernel (one batch element per grid step)
# ----------------------------------------------------------------------------
def encoder_layer_kernel(x_ref,
                         wqkv_ref, bqkv_ref,
                         wo_ref, bo_ref,
                         w1_ref, b1_ref, w2_ref, b2_ref,
                         g1_ref, be1_ref, g2_ref, be2_ref,
                         y_ref,
                         heads_ref, ctx_ref,
                         *, num_heads):
    f32 = jnp.float32
    x_lowp = x_ref[0]                       # [L, D] in compute dtype (bf16)
    x = x_lowp.astype(f32)
    L, D = x.shape
    H = num_heads
    dh = D // H
    cdt = x_lowp.dtype                      # MXU operand dtype

    # --- fused QKV projection: ONE wide matmul [L, D] @ [D, 3D] (MXU).
    #     1/sqrt(dh) already folded into the query columns host-side. ---
    qkv = jnp.dot(x_lowp, wqkv_ref[...],
                  preferred_element_type=f32) + bqkv_ref[...]        # [L, 3D] f32

    # --- head split: layout plumbing only (copies into VMEM scratch).
    #     Compute below is fully head-batched; no per-head transpose/concat. ---
    for h in range(H):                      # static unroll, data movement only
        heads_ref[0, h] = qkv[:, h * dh:(h + 1) * dh]                   # q (pre-scaled)
        heads_ref[1, h] = qkv[:, D + h * dh:D + (h + 1) * dh]           # k
        heads_ref[2, h] = qkv[:, 2 * D + h * dh:2 * D + (h + 1) * dh]   # v

    q = heads_ref[0].astype(cdt)            # [H, L, dh]
    k = heads_ref[1].astype(cdt)            # [H, L, dh]
    v = heads_ref[2].astype(cdt)            # [H, L, dh]

    # --- batched scaled-dot-product attention over heads ---
    s = jnp.einsum('hld,hsd->hls', q, k, preferred_element_type=f32)    # [H, L, L]
    m = jnp.max(s, axis=-1, keepdims=True)
    e = jnp.exp(s - m)
    denom = jnp.sum(e, axis=-1, keepdims=True)
    p = e * pl.reciprocal(denom, approx=True)                           # EUP, not VALU div
    ctx = jnp.einsum('hls,hsd->hld', p.astype(cdt), v,
                     preferred_element_type=f32)                        # [H, L, dh]

    # --- merge heads back to [L, D] (lane-offset stores into scratch) ---
    for h in range(H):                      # static unroll, data movement only
        ctx_ref[:, h * dh:(h + 1) * dh] = ctx[h]
    attn_out = jnp.dot(ctx_ref[...].astype(cdt), wo_ref[...],
                       preferred_element_type=f32) + bo_ref[...]        # [L, D]

    # --- residual + layernorm 1 (f32 statistics) ---
    h1 = x + attn_out
    mu1 = jnp.mean(h1, axis=-1, keepdims=True)
    var1 = jnp.mean((h1 - mu1) ** 2, axis=-1, keepdims=True)
    h1n = (h1 - mu1) * jax.lax.rsqrt(var1 + 1e-5) * g1_ref[...] + be1_ref[...]

    # --- FFN (1x1 convs == linears), GELU ('gelu' activation in Edge_encoder;
    #     tanh approximation, difference vs torch's erf GELU is ~1e-3) ---
    f = jnp.dot(h1n.astype(cdt), w1_ref[...],
                preferred_element_type=f32) + b1_ref[...]
    f = jax.nn.gelu(f, approximate=True)
    f = jnp.dot(f.astype(cdt), w2_ref[...],
                preferred_element_type=f32) + b2_ref[...]

    # --- residual + layernorm 2 ---
    h2 = h1n + f
    mu2 = jnp.mean(h2, axis=-1, keepdims=True)
    var2 = jnp.mean((h2 - mu2) ** 2, axis=-1, keepdims=True)
    y_ref[0] = ((h2 - mu2) * jax.lax.rsqrt(var2 + 1e-5) * g2_ref[...]
                + be2_ref[...]).astype(y_ref.dtype)


# ----------------------------------------------------------------------------
# Wrapper: host-side weight fusion / casting + pallas_call
# ----------------------------------------------------------------------------
def encoder_layer_forward(x, params, num_heads, *, compute_dtype=jnp.bfloat16):
    """One fused Informer EncoderLayer.  x: [B, L, D] f32 -> [B, L, D] f32."""
    B, L, D = x.shape
    assert D % num_heads == 0
    dh = D // num_heads
    d_ff = params["w1"].shape[1]
    scale = 1.0 / math.sqrt(dh)

    # Fuse Q|K|V into one [D, 3D] operand with the softmax scale folded into
    # the query columns (no per-head multiply in the kernel); cast matmul
    # operands to the MXU compute dtype.  Biases / layernorm params stay f32.
    wqkv = jnp.concatenate([params["wq"] * scale, params["wk"], params["wv"]],
                           axis=1).astype(compute_dtype)
    bqkv = jnp.concatenate([params["bq"] * scale, params["bk"], params["bv"]],
                           axis=1).astype(jnp.float32)
    wo = params["wo"].astype(compute_dtype)
    w1 = params["w1"].astype(compute_dtype)
    w2 = params["w2"].astype(compute_dtype)
    bo, b1, b2 = (params[n].astype(jnp.float32) for n in ("bo", "b1", "b2"))
    g1, be1, g2, be2 = (params[n].astype(jnp.float32)
                        for n in ("g1", "be1", "g2", "be2"))
    x_c = x.astype(compute_dtype)

    consts = [wqkv, bqkv, wo, bo, w1, b1, w2, b2, g1, be1, g2, be2]

    def const_spec(a):
        # Constant index map -> weights stay resident in VMEM across the grid
        # (loaded once, O(1) weight traffic instead of O(B)).
        nd = a.ndim
        return pl.BlockSpec(a.shape, lambda b, _nd=nd: (0,) * _nd)

    scratch_shapes = [
        pltpu.VMEM((3, num_heads, L, dh), jnp.float32),   # per-head q/k/v slabs
        pltpu.VMEM((L, D), jnp.float32),                  # merged attention context
    ]
    scratch_bytes = (3 * num_heads * L * dh + L * D) * 4
    const_bytes = sum(a.size * a.dtype.itemsize for a in consts)

    # Re-derived VMEM budget: double-buffered per-step x/y blocks + resident
    # weights + scratch + margin, capped below v7x's 64 MiB physical VMEM.
    block_bytes = L * D * x_c.dtype.itemsize + L * D * 4 + const_bytes
    vmem_limit = int(min(48 * 2**20,
                         max(16 * 2**20, 2 * block_bytes + scratch_bytes + (1 << 20))))

    # Advisory cost hint for the XLA scheduler around the custom call.
    flops = B * (2 * L * D * 3 * D + 4 * L * L * D + 2 * L * D * D
                 + 4 * L * D * d_ff)
    transcendentals = B * (num_heads * L * L + L * d_ff)
    bytes_accessed = int(B * L * D * (x_c.dtype.itemsize + 4) + const_bytes)

    y = pl.pallas_call(
        functools.partial(encoder_layer_kernel, num_heads=num_heads),
        out_shape=jax.ShapeDtypeStruct((B, L, D), jnp.float32),
        grid=(B,),
        in_specs=[pl.BlockSpec((1, L, D), lambda b: (b, 0, 0))]
                 + [const_spec(a) for a in consts],
        out_specs=pl.BlockSpec((1, L, D), lambda b: (b, 0, 0)),
        scratch_shapes=scratch_shapes,
        compiler_params=pltpu.CompilerParams(
            dimension_semantics=("parallel",),   # independent batch steps
            vmem_limit_bytes=vmem_limit,
        ),
        cost_estimate=pl.CostEstimate(flops=flops,
                                      transcendentals=transcendentals,
                                      bytes_accessed=bytes_accessed),
    )(x_c, *consts)

    # TODO(synk): for long sequences add a query-tile grid axis (flash-style
    #             running softmax) so full [L, L] scores never materialize.
    return y


# ----------------------------------------------------------------------------
# Plain-JAX glue for the rest of Edge_encoder.forward (eval-mode semantics)
# ----------------------------------------------------------------------------
def _layer_norm(x, g, b, eps=1e-5):
    mu = jnp.mean(x, axis=-1, keepdims=True)
    var = jnp.mean((x - mu) ** 2, axis=-1, keepdims=True)
    return (x - mu) * jax.lax.rsqrt(var + eps) * g + b


def _positional_encoding(L, D):
    pos = jnp.arange(L, dtype=jnp.float32)[:, None]
    div = jnp.exp(jnp.arange(0, D, 2, dtype=jnp.float32) * (-math.log(10000.0) / D))
    pe = jnp.zeros((L, D), jnp.float32)
    pe = pe.at[:, 0::2].set(jnp.sin(pos * div))
    pe = pe.at[:, 1::2].set(jnp.cos(pos * div))
    return pe


def _circular_conv_seq(x, w3, b):
    # Conv1d(D_in, D_out, kernel_size=3, padding=1, padding_mode='circular')
    # along the sequence axis: [B, L, D_in] -> [B, L, D_out].
    # w3: [3, D_in, D_out] so y[l] = sum_j x[(l-1+j) mod L] @ w3[j] + b.
    # TODO(synk): fuse into a Pallas kernel via sublane pltpu.roll.
    return (jnp.roll(x, 1, axis=1) @ w3[0] + x @ w3[1]
            + jnp.roll(x, -1, axis=1) @ w3[2]) + b


def _conv_layer(x, cp):
    # Informer ConvLayer: circular conv(k=3) over seq + BatchNorm1d (eval
    # running stats) + ELU + MaxPool1d(kernel=3, stride=2, padding=1).
    # TODO(synk): fuse into a Pallas kernel (sublane rolls + stride-2 pooling).
    y = _circular_conv_seq(x, cp["w"], cp["b"])
    y = (y - cp["bn_m"]) * jax.lax.rsqrt(cp["bn_v"] + 1e-5) * cp["bn_g"] + cp["bn_b"]
    y = jnp.where(y > 0, y, jnp.expm1(y))                     # ELU(alpha=1)
    B, L, D = y.shape
    L_out = (L - 1) // 2 + 1
    neg = jnp.full((B, 1, D), -jnp.inf, y.dtype)
    yp = jnp.concatenate([neg, y, neg], axis=1)               # -inf pool padding
    return jnp.maximum(jnp.maximum(yp[:, 0:2 * L_out:2, :],
                                   yp[:, 1:2 * L_out:2, :]),
                       yp[:, 2:2 * L_out + 1:2, :])


def _edge_encoder_forward(src, params, num_heads, layer_fn):
    # Edge_encoder.forward (eval mode).  src_mask / src_key_padding_mask are
    # unused: FullAttention is constructed with mask_flag=False.
    x = jnp.nan_to_num(src)
    x = x @ params["w_in"] + params["b_in"]                   # input_fc
    B, L, D = x.shape
    pe = _positional_encoding(L, D)
    # pos_embedding(x) + value_embedding(x) + x   (dropout = identity in eval)
    x = (x + pe) + _circular_conv_seq(x, params["w_tok"], params["b_tok"]) + x

    # --- EncoderStack: encoder i sees the last L // 2**i tokens ---
    outs = []
    for i, enc in enumerate(params["stack"]):
        xs = x[:, -(L // (2 ** i)):, :]
        n_layers = len(enc["layers"])
        for li, lp in enumerate(enc["layers"]):
            xs = layer_fn(xs, lp, num_heads)                  # fused Pallas layer
            if li < n_layers - 1:                             # distil conv between layers
                xs = _conv_layer(xs, enc["convs"][li])
        xs = _layer_norm(xs, enc["norm_g"], enc["norm_b"])    # InformerEncoder norm
        outs.append(xs)
    memory = jnp.concatenate(outs, axis=1)

    memory = memory @ params["w_out"] + params["b_out"]       # output_fc
    # permute(0, 2, 1) + AdaptiveAvgPool1d(1) + reshape(b, c) == mean over seq
    return jnp.mean(memory, axis=1)


@functools.partial(jax.jit, static_argnums=(2,))
def edge_encoder_forward(src, params, num_heads):
    return _edge_encoder_forward(src, params, num_heads, encoder_layer_forward)


# ----------------------------------------------------------------------------
# Pure-JAX reference encoder layer (f32) for the correctness check
# ----------------------------------------------------------------------------
def encoder_layer_ref(x, p, num_heads):
    B, L, D = x.shape
    H, dh = num_heads, D // num_heads
    q = (x @ p["wq"] + p["bq"]).reshape(B, L, H, dh)
    k = (x @ p["wk"] + p["bk"]).reshape(B, L, H, dh)
    v = (x @ p["wv"] + p["bv"]).reshape(B, L, H, dh)
    s = jnp.einsum("blhe,bshe->bhls", q, k) / math.sqrt(dh)
    a = jax.nn.softmax(s, axis=-1)
    o = jnp.einsum("bhls,bshd->blhd", a, v).reshape(B, L, D)
    h1 = _layer_norm(x + (o @ p["wo"] + p["bo"]), p["g1"], p["be1"])
    f = jax.nn.gelu(h1 @ p["w1"] + p["b1"], approximate=True)
    f = f @ p["w2"] + p["b2"]
    return _layer_norm(h1 + f, p["g2"], p["be2"])


def edge_encoder_forward_ref(src, params, num_heads):
    return _edge_encoder_forward(src, params, num_heads, encoder_layer_ref)


# ----------------------------------------------------------------------------
# Deterministic parameter construction (f32 "master" weights)
# ----------------------------------------------------------------------------
def make_layer_params(key, d_model, d_ff):
    ks = jax.random.split(key, 12)
    s = 0.02
    n = jax.random.normal
    return {
        "wq": s * n(ks[0], (d_model, d_model), jnp.float32),
        "bq": s * n(ks[1], (1, d_model), jnp.float32),
        "wk": s * n(ks[2], (d_model, d_model), jnp.float32),
        "bk": s * n(ks[3], (1, d_model), jnp.float32),
        "wv": s * n(ks[4], (d_model, d_model), jnp.float32),
        "bv": s * n(ks[5], (1, d_model), jnp.float32),
        "wo": s * n(ks[6], (d_model, d_model), jnp.float32),
        "bo": s * n(ks[7], (1, d_model), jnp.float32),
        "w1": s * n(ks[8], (d_model, d_ff), jnp.float32),
        "b1": s * n(ks[9], (1, d_ff), jnp.float32),
        "w2": s * n(ks[10], (d_ff, d_model), jnp.float32),
        "b2": s * n(ks[11], (1, d_model), jnp.float32),
        "g1": jnp.ones((1, d_model), jnp.float32),
        "be1": jnp.zeros((1, d_model), jnp.float32),
        "g2": jnp.ones((1, d_model), jnp.float32),
        "be2": jnp.zeros((1, d_model), jnp.float32),
    }


def make_conv_params(key, d_model):
    k1, k2 = jax.random.split(key)
    s = 0.02
    return {
        "w": s * jax.random.normal(k1, (3, d_model, d_model), jnp.float32),
        "b": s * jax.random.normal(k2, (d_model,), jnp.float32),
        # freshly-initialized BatchNorm1d running stats / affine (eval mode)
        "bn_g": jnp.ones((d_model,), jnp.float32),
        "bn_b": jnp.zeros((d_model,), jnp.float32),
        "bn_m": jnp.zeros((d_model,), jnp.float32),
        "bn_v": jnp.ones((d_model,), jnp.float32),
    }


def make_encoder_params(key, d_model, d_ff, n_layers):
    ks = jax.random.split(key, 2 * n_layers)
    return {
        "layers": [make_layer_params(ks[i], d_model, d_ff) for i in range(n_layers)],
        "convs": [make_conv_params(ks[n_layers + i], d_model)
                  for i in range(n_layers - 1)],
        "norm_g": jnp.ones((d_model,), jnp.float32),
        "norm_b": jnp.zeros((d_model,), jnp.float32),
    }


def make_edge_encoder_params(key, ninp, d_model, d_ff, noutput, e_layers):
    ks = jax.random.split(key, 6 + len(e_layers))
    s = 0.02
    n = jax.random.normal
    return {
        "w_in": s * n(ks[0], (ninp, d_model), jnp.float32),
        "b_in": s * n(ks[1], (d_model,), jnp.float32),
        "w_tok": s * n(ks[2], (3, d_model, d_model), jnp.float32),
        "b_tok": s * n(ks[3], (d_model,), jnp.float32),
        "w_out": s * n(ks[4], (d_model, noutput), jnp.float32),
        "b_out": s * n(ks[5], (noutput,), jnp.float32),
        "stack": [make_encoder_params(ks[6 + i], d_model, d_ff, el)
                  for i, el in enumerate(e_layers)],
    }


if __name__ == "__main__":
    # Small shapes consistent with Edge_encoder (scaled down from
    # ninp=14, d_model=256, n_heads=8, d_ff=256, e_layers=[6, 5, 3, 2, 1]).
    B, L, ninp = 2, 8, 8
    d_model, num_heads, d_ff, noutput = 32, 4, 64, 16
    e_layers = [2, 1]          # encoder0: 2 layers + 1 distil conv; encoder1: 1 layer

    root = jax.random.PRNGKey(0)
    k_src, k_par = jax.random.split(root)
    src = jax.random.normal(k_src, (B, L, ninp), jnp.float32)
    src = src.at[0, 0, 0].set(jnp.nan)     # exercised by torch.nan_to_num

    params = make_edge_encoder_params(k_par, ninp, d_model, d_ff, noutput, e_layers)

    out = edge_encoder_forward(src, params, num_heads)
    out = jax.block_until_ready(out)

    assert out.shape == (B, noutput), out.shape
    assert bool(jnp.all(jnp.isfinite(out)))

    # numerical check against the pure-JAX f32 reference (bf16-weight tolerance)
    ref = edge_encoder_forward_ref(src, params, num_heads)
    max_err = float(jnp.max(jnp.abs(out - ref)))
    assert max_err < 5e-2, max_err

    print("KERNEL_OK")
</pallas_src>

<mosaic_0001>
module attributes {stable_mosaic.version = 11 : i64} {
  func.func @encoder_layer_kernel(%arg0: i32, %arg1: memref<1x8x32xbf16, #tpu.memory_space<vmem>>, %arg2: memref<32x96xbf16, #tpu.memory_space<vmem>>, %arg3: memref<1x96xf32, #tpu.memory_space<vmem>>, %arg4: memref<32x32xbf16, #tpu.memory_space<vmem>>, %arg5: memref<1x32xf32, #tpu.memory_space<vmem>>, %arg6: memref<32x64xbf16, #tpu.memory_space<vmem>>, %arg7: memref<1x64xf32, #tpu.memory_space<vmem>>, %arg8: memref<64x32xbf16, #tpu.memory_space<vmem>>, %arg9: memref<1x32xf32, #tpu.memory_space<vmem>>, %arg10: memref<1x32xf32, #tpu.memory_space<vmem>>, %arg11: memref<1x32xf32, #tpu.memory_space<vmem>>, %arg12: memref<1x32xf32, #tpu.memory_space<vmem>>, %arg13: memref<1x32xf32, #tpu.memory_space<vmem>>, %arg14: memref<1x8x32xf32, #tpu.memory_space<vmem>>, %arg15: memref<3x4x8x8xf32, #tpu.memory_space<vmem>>, %arg16: memref<8x32xf32, #tpu.memory_space<vmem>>) attributes {dimension_semantics = [#tpu.dimension_semantics<parallel>], iteration_bounds = array<i64: 2>, scalar_prefetch = 0 : i64, scratch_operands = 2 : i64, tpu.core_type = #tpu.core_type<tc>, window_params = [{transform_indices = @transform_0, window_bounds = array<i64: 1, 8, 32>}, {pipeline_mode = #tpu.pipeline_mode<synchronous>, transform_indices = @transform_1, window_bounds = array<i64: 32, 96>}, {pipeline_mode = #tpu.pipeline_mode<synchronous>, transform_indices = @transform_2, window_bounds = array<i64: 1, 96>}, {pipeline_mode = #tpu.pipeline_mode<synchronous>, transform_indices = @transform_3, window_bounds = array<i64: 32, 32>}, {pipeline_mode = #tpu.pipeline_mode<synchronous>, transform_indices = @transform_4, window_bounds = array<i64: 1, 32>}, {pipeline_mode = #tpu.pipeline_mode<synchronous>, transform_indices = @transform_5, window_bounds = array<i64: 32, 64>}, {pipeline_mode = #tpu.pipeline_mode<synchronous>, transform_indices = @transform_6, window_bounds = array<i64: 1, 64>}, {pipeline_mode = #tpu.pipeline_mode<synchronous>, transform_indices = @transform_7, window_bounds = array<i64: 64, 32>}, {pipeline_mode = #tpu.pipeline_mode<synchronous>, transform_indices = @transform_8, window_bounds = array<i64: 1, 32>}, {pipeline_mode = #tpu.pipeline_mode<synchronous>, transform_indices = @transform_9, window_bounds = array<i64: 1, 32>}, {pipeline_mode = #tpu.pipeline_mode<synchronous>, transform_indices = @transform_10, window_bounds = array<i64: 1, 32>}, {pipeline_mode = #tpu.pipeline_mode<synchronous>, transform_indices = @transform_11, window_bounds = array<i64: 1, 32>}, {pipeline_mode = #tpu.pipeline_mode<synchronous>, transform_indices = @transform_12, window_bounds = array<i64: 1, 32>}, {transform_indices = @transform_13, window_bounds = array<i64: 1, 8, 32>}]} {
    %c0 = arith.constant 0 : index
    %c0_0 = arith.constant 0 : index
    %c0_1 = arith.constant 0 : index
    %0 = vector.load %arg1[%c0, %c0_0, %c0_1] : memref<1x8x32xbf16, #tpu.memory_space<vmem>>, vector<1x8x32xbf16>
    %1 = vector.shape_cast %0 : vector<1x8x32xbf16> to vector<8x32xbf16>
    %2 = arith.extf %1 : vector<8x32xbf16> to vector<8x32xf32>
    %c0_2 = arith.constant 0 : index
    %c0_3 = arith.constant 0 : index
    %3 = vector.load %arg2[%c0_2, %c0_3] : memref<32x96xbf16, #tpu.memory_space<vmem>>, vector<32x96xbf16>
    %cst = arith.constant dense<0.000000e+00> : vector<8x96xf32>
    %4 = tpu.matmul %1, %3, %cst {dimension_numbers = #tpu.dot_dimension_numbers<[1], [0], [0], [1], [0, 0, 1, 1], [], []>} : vector<8x32xbf16>, vector<32x96xbf16>, vector<8x96xf32> -> vector<8x96xf32>
    %c0_4 = arith.constant 0 : index
    %c0_5 = arith.constant 0 : index
    %5 = vector.load %arg3[%c0_4, %c0_5] : memref<1x96xf32, #tpu.memory_space<vmem>>, vector<1x96xf32>
    %6 = vector.broadcast %5 : vector<1x96xf32> to vector<8x96xf32>
    %7 = arith.addf %4, %6 : vector<8x96xf32>
    %8 = vector.extract_strided_slice %7 {offsets = [0, 0], sizes = [8, 8], strides = [1, 1]} : vector<8x96xf32> to vector<8x8xf32>
    %c0_6 = arith.constant 0 : index
    %c0_7 = arith.constant 0 : index
    %c0_8 = arith.constant 0 : index
    %c0_9 = arith.constant 0 : index
    %9 = vector.load %arg15[%c0_6, %c0_7, %c0_8, %c0_9] : memref<3x4x8x8xf32, #tpu.memory_space<vmem>>, vector<1x1x8x8xf32>
    %10 = vector.shape_cast %9 : vector<1x1x8x8xf32> to vector<8x8xf32>
    %11 = vector.shape_cast %8 : vector<8x8xf32> to vector<1x1x8x8xf32>
    tpu.vector_store %arg15[%c0_6, %c0_7, %c0_8, %c0_9], %11 {strides = array<i32>} : memref<3x4x8x8xf32, #tpu.memory_space<vmem>>, vector<1x1x8x8xf32>,
    %12 = vector.extract_strided_slice %7 {offsets = [0, 32], sizes = [8, 8], strides = [1, 1]} : vector<8x96xf32> to vector<8x8xf32>
    %c1 = arith.constant 1 : index
    %c0_10 = arith.constant 0 : index
    %c0_11 = arith.constant 0 : index
    %c0_12 = arith.constant 0 : index
    %13 = vector.load %arg15[%c1, %c0_10, %c0_11, %c0_12] : memref<3x4x8x8xf32, #tpu.memory_space<vmem>>, vector<1x1x8x8xf32>
    %14 = vector.shape_cast %13 : vector<1x1x8x8xf32> to vector<8x8xf32>
    %15 = vector.shape_cast %12 : vector<8x8xf32> to vector<1x1x8x8xf32>
    tpu.vector_store %arg15[%c1, %c0_10, %c0_11, %c0_12], %15 {strides = array<i32>} : memref<3x4x8x8xf32, #tpu.memory_space<vmem>>, vector<1x1x8x8xf32>,
    %16 = vector.extract_strided_slice %7 {offsets = [0, 64], sizes = [8, 8], strides = [1, 1]} : vector<8x96xf32> to vector<8x8xf32>
    %c2 = arith.constant 2 : index
    %c0_13 = arith.constant 0 : index
    %c0_14 = arith.constant 0 : index
    %c0_15 = arith.constant 0 : index
    %17 = vector.load %arg15[%c2, %c0_13, %c0_14, %c0_15] : memref<3x4x8x8xf32, #tpu.memory_space<vmem>>, vector<1x1x8x8xf32>
    %18 = vector.shape_cast %17 : vector<1x1x8x8xf32> to vector<8x8xf32>
    %19 = vector.shape_cast %16 : vector<8x8xf32> to vector<1x1x8x8xf32>
    tpu.vector_store %arg15[%c2, %c0_13, %c0_14, %c0_15], %19 {strides = array<i32>} : memref<3x4x8x8xf32, #tpu.memory_space<vmem>>, vector<1x1x8x8xf32>,
    %20 = vector.extract_strided_slice %7 {offsets = [0, 8], sizes = [8, 8], strides = [1, 1]} : vector<8x96xf32> to vector<8x8xf32>
    %c0_16 = arith.constant 0 : index
    %c1_17 = arith.constant 1 : index
    %c0_18 = arith.constant 0 : index
    %c0_19 = arith.constant 0 : index
    %21 = vector.load %arg15[%c0_16, %c1_17, %c0_18, %c0_19] : memref<3x4x8x8xf32, #tpu.memory_space<vmem>>, vector<1x1x8x8xf32>
    %22 = vector.shape_cast %21 : vector<1x1x8x8xf32> to vector<8x8xf32>
    %23 = vector.shape_cast %20 : vector<8x8xf32> to vector<1x1x8x8xf32>
    tpu.vector_store %arg15[%c0_16, %c1_17, %c0_18, %c0_19], %23 {strides = array<i32>} : memref<3x4x8x8xf32, #tpu.memory_space<vmem>>, vector<1x1x8x8xf32>,
    %24 = vector.extract_strided_slice %7 {offsets = [0, 40], sizes = [8, 8], strides = [1, 1]} : vector<8x96xf32> to vector<8x8xf32>
    %c1_20 = arith.constant 1 : index
    %c1_21 = arith.constant 1 : index
    %c0_22 = arith.constant 0 : index
    %c0_23 = arith.constant 0 : index
    %25 = vector.load %arg15[%c1_20, %c1_21, %c0_22, %c0_23] : memref<3x4x8x8xf32, #tpu.memory_space<vmem>>, vector<1x1x8x8xf32>
    %26 = vector.shape_cast %25 : vector<1x1x8x8xf32> to vector<8x8xf32>
    %27 = vector.shape_cast %24 : vector<8x8xf32> to vector<1x1x8x8xf32>
    tpu.vector_store %arg15[%c1_20, %c1_21, %c0_22, %c0_23], %27 {strides = array<i32>} : memref<3x4x8x8xf32, #tpu.memory_space<vmem>>, vector<1x1x8x8xf32>,
    %28 = vector.extract_strided_slice %7 {offsets = [0, 72], sizes = [8, 8], strides = [1, 1]} : vector<8x96xf32> to vector<8x8xf32>
    %c2_24 = arith.constant 2 : index
    %c1_25 = arith.constant 1 : index
    %c0_26 = arith.constant 0 : index
    %c0_27 = arith.constant 0 : index
    %29 = vector.load %arg15[%c2_24, %c1_25, %c0_26, %c0_27] : memref<3x4x8x8xf32, #tpu.memory_space<vmem>>, vector<1x1x8x8xf32>
    %30 = vector.shape_cast %29 : vector<1x1x8x8xf32> to vector<8x8xf32>
    %31 = vector.shape_cast %28 : vector<8x8xf32> to vector<1x1x8x8xf32>
    tpu.vector_store %arg15[%c2_24, %c1_25, %c0_26, %c0_27], %31 {strides = array<i32>} : memref<3x4x8x8xf32, #tpu.memory_space<vmem>>, vector<1x1x8x8xf32>,
    %32 = vector.extract_strided_slice %7 {offsets = [0, 16], sizes = [8, 8], strides = [1, 1]} : vector<8x96xf32> to vector<8x8xf32>
    %c0_28 = arith.constant 0 : index
    %c2_29 = arith.constant 2 : index
    %c0_30 = arith.constant 0 : index
    %c0_31 = arith.constant 0 : index
    %33 = vector.load %arg15[%c0_28, %c2_29, %c0_30, %c0_31] : memref<3x4x8x8xf32, #tpu.memory_space<vmem>>, vector<1x1x8x8xf32>
    %34 = vector.shape_cast %33 : vector<1x1x8x8xf32> to vector<8x8xf32>
    %35 = vector.shape_cast %32 : vector<8x8xf32> to vector<1x1x8x8xf32>
    tpu.vector_store %arg15[%c0_28, %c2_29, %c0_30, %c0_31], %35 {strides = array<i32>} : memref<3x4x8x8xf32, #tpu.memory_space<vmem>>, vector<1x1x8x8xf32>,
    %36 = vector.extract_strided_slice %7 {offsets = [0, 48], sizes = [8, 8], strides = [1, 1]} : vector<8x96xf32> to vector<8x8xf32>
    %c1_32 = arith.constant 1 : index
    %c2_33 = arith.constant 2 : index
    %c0_34 = arith.constant 0 : index
    %c0_35 = arith.constant 0 : index
    %37 = vector.load %arg15[%c1_32, %c2_33, %c0_34, %c0_35] : memref<3x4x8x8xf32, #tpu.memory_space<vmem>>, vector<1x1x8x8xf32>
    %38 = vector.shape_cast %37 : vector<1x1x8x8xf32> to vector<8x8xf32>
    %39 = vector.shape_cast %36 : vector<8x8xf32> to vector<1x1x8x8xf32>
    tpu.vector_store %arg15[%c1_32, %c2_33, %c0_34, %c0_35], %39 {strides = array<i32>} : memref<3x4x8x8xf32, #tpu.memory_space<vmem>>, vector<1x1x8x8xf32>,
    %40 = vector.extract_strided_slice %7 {offsets = [0, 80], sizes = [8, 8], strides = [1, 1]} : vector<8x96xf32> to vector<8x8xf32>
    %c2_36 = arith.constant 2 : index
    %c2_37 = arith.constant 2 : index
    %c0_38 = arith.constant 0 : index
    %c0_39 = arith.constant 0 : index
    %41 = vector.load %arg15[%c2_36, %c2_37, %c0_38, %c0_39] : memref<3x4x8x8xf32, #tpu.memory_space<vmem>>, vector<1x1x8x8xf32>
    %42 = vector.shape_cast %41 : vector<1x1x8x8xf32> to vector<8x8xf32>
    %43 = vector.shape_cast %40 : vector<8x8xf32> to vector<1x1x8x8xf32>
    tpu.vector_store %arg15[%c2_36, %c2_37, %c0_38, %c0_39], %43 {strides = array<i32>} : memref<3x4x8x8xf32, #tpu.memory_space<vmem>>, vector<1x1x8x8xf32>,
    %44 = vector.extract_strided_slice %7 {offsets = [0, 24], sizes = [8, 8], strides = [1, 1]} : vector<8x96xf32> to vector<8x8xf32>
    %c0_40 = arith.constant 0 : index
    %c3 = arith.constant 3 : index
    %c0_41 = arith.constant 0 : index
    %c0_42 = arith.constant 0 : index
    %45 = vector.load %arg15[%c0_40, %c3, %c0_41, %c0_42] : memref<3x4x8x8xf32, #tpu.memory_space<vmem>>, vector<1x1x8x8xf32>
    %46 = vector.shape_cast %45 : vector<1x1x8x8xf32> to vector<8x8xf32>
    %47 = vector.shape_cast %44 : vector<8x8xf32> to vector<1x1x8x8xf32>
    tpu.vector_store %arg15[%c0_40, %c3, %c0_41, %c0_42], %47 {strides = array<i32>} : memref<3x4x8x8xf32, #tpu.memory_space<vmem>>, vector<1x1x8x8xf32>,
    %48 = vector.extract_strided_slice %7 {offsets = [0, 56], sizes = [8, 8], strides = [1, 1]} : vector<8x96xf32> to vector<8x8xf32>
    %c1_43 = arith.constant 1 : index
    %c3_44 = arith.constant 3 : index
    %c0_45 = arith.constant 0 : index
    %c0_46 = arith.constant 0 : index
    %49 = vector.load %arg15[%c1_43, %c3_44, %c0_45, %c0_46] : memref<3x4x8x8xf32, #tpu.memory_space<vmem>>, vector<1x1x8x8xf32>
    %50 = vector.shape_cast %49 : vector<1x1x8x8xf32> to vector<8x8xf32>
    %51 = vector.shape_cast %48 : vector<8x8xf32> to vector<1x1x8x8xf32>
    tpu.vector_store %arg15[%c1_43, %c3_44, %c0_45, %c0_46], %51 {strides = array<i32>} : memref<3x4x8x8xf32, #tpu.memory_space<vmem>>, vector<1x1x8x8xf32>,
    %52 = vector.extract_strided_slice %7 {offsets = [0, 88], sizes = [8, 8], strides = [1, 1]} : vector<8x96xf32> to vector<8x8xf32>
    %c2_47 = arith.constant 2 : index
    %c3_48 = arith.constant 3 : index
    %c0_49 = arith.constant 0 : index
    %c0_50 = arith.constant 0 : index
    %53 = vector.load %arg15[%c2_47, %c3_48, %c0_49, %c0_50] : memref<3x4x8x8xf32, #tpu.memory_space<vmem>>, vector<1x1x8x8xf32>
    %54 = vector.shape_cast %53 : vector<1x1x8x8xf32> to vector<8x8xf32>
    %55 = vector.shape_cast %52 : vector<8x8xf32> to vector<1x1x8x8xf32>
    tpu.vector_store %arg15[%c2_47, %c3_48, %c0_49, %c0_50], %55 {strides = array<i32>} : memref<3x4x8x8xf32, #tpu.memory_space<vmem>>, vector<1x1x8x8xf32>,
    %c0_51 = arith.constant 0 : index
    %c0_52 = arith.constant 0 : index
    %c0_53 = arith.constant 0 : index
    %c0_54 = arith.constant 0 : index
    %56 = vector.load %arg15[%c0_51, %c0_52, %c0_53, %c0_54] : memref<3x4x8x8xf32, #tpu.memory_space<vmem>>, vector<1x4x8x8xf32>
    %57 = vector.shape_cast %56 : vector<1x4x8x8xf32> to vector<4x8x8xf32>
    %58 = arith.truncf %57 : vector<4x8x8xf32> to vector<4x8x8xbf16>
    %c1_55 = arith.constant 1 : index
    %c0_56 = arith.constant 0 : index
    %c0_57 = arith.constant 0 : index
    %c0_58 = arith.constant 0 : index
    %59 = vector.load %arg15[%c1_55, %c0_56, %c0_57, %c0_58] : memref<3x4x8x8xf32, #tpu.memory_space<vmem>>, vector<1x4x8x8xf32>
    %60 = vector.shape_cast %59 : vector<1x4x8x8xf32> to vector<4x8x8xf32>
    %61 = arith.truncf %60 : vector<4x8x8xf32> to vector<4x8x8xbf16>
    %c2_59 = arith.constant 2 : index
    %c0_60 = arith.constant 0 : index
    %c0_61 = arith.constant 0 : index
    %c0_62 = arith.constant 0 : index
    %62 = vector.load %arg15[%c2_59, %c0_60, %c0_61, %c0_62] : memref<3x4x8x8xf32, #tpu.memory_space<vmem>>, vector<1x4x8x8xf32>
    %63 = vector.shape_cast %62 : vector<1x4x8x8xf32> to vector<4x8x8xf32>
    %64 = arith.truncf %63 : vector<4x8x8xf32> to vector<4x8x8xbf16>
    "tpu.trace_start"() <{level = 10 : i32, message = "hld,hsd->hls"}> : () -> ()
    %cst_63 = arith.constant dense<0.000000e+00> : vector<4x8x8xf32>
    %65 = tpu.matmul %58, %61, %cst_63 {dimension_numbers = #tpu.dot_dimension_numbers<[2], [2], [1], [1], [0, 0, 0, 1, 1, 1], [0], [0]>} : vector<4x8x8xbf16>, vector<4x8x8xbf16>, vector<4x8x8xf32> -> vector<4x8x8xf32>
    "tpu.trace_stop"() : () -> ()
    %cst_64 = arith.constant dense<0xFF800000> : vector<4x8xf32>
    %66 = vector.multi_reduction <maximumf>, %65, %cst_64 [2] : vector<4x8x8xf32> to vector<4x8xf32>
    %67 = vector.shape_cast %66 : vector<4x8xf32> to vector<4x8x1xf32>
    %68 = vector.broadcast %67 : vector<4x8x1xf32> to vector<4x8x8xf32>
    %69 = arith.subf %65, %68 : vector<4x8x8xf32>
    %70 = math.exp %69 : vector<4x8x8xf32>
    %cst_65 = arith.constant dense<0.000000e+00> : vector<4x8xf32>
    %71 = vector.multi_reduction <add>, %70, %cst_65 [2] : vector<4x8x8xf32> to vector<4x8xf32>
    %72 = vector.shape_cast %71 : vector<4x8xf32> to vector<4x8x1xf32>
    %73 = tpu.reciprocal %72 {approx = true} : vector<4x8x1xf32> -> vector<4x8x1xf32>
    %74 = vector.broadcast %73 : vector<4x8x1xf32> to vector<4x8x8xf32>
    %75 = arith.mulf %70, %74 : vector<4x8x8xf32>
    %76 = arith.truncf %75 : vector<4x8x8xf32> to vector<4x8x8xbf16>
    "tpu.trace_start"() <{level = 10 : i32, message = "hls,hsd->hld"}> : () -> ()
    %cst_66 = arith.constant dense<0.000000e+00> : vector<4x8x8xf32>
    %77 = tpu.matmul %76, %64, %cst_66 {dimension_numbers = #tpu.dot_dimension_numbers<[2], [1], [1], [2], [0, 0, 0, 1, 1, 2], [0], [0]>} : vector<4x8x8xbf16>, vector<4x8x8xbf16>, vector<4x8x8xf32> -> vector<4x8x8xf32>
    "tpu.trace_stop"() : () -> ()
    %78 = vector.extract_strided_slice %77 {offsets = [0, 0, 0], sizes = [1, 8, 8], strides = [1, 1, 1]} : vector<4x8x8xf32> to vector<1x8x8xf32>
    %79 = vector.shape_cast %78 : vector<1x8x8xf32> to vector<8x8xf32>
    %c0_67 = arith.constant 0 : index
    %c0_68 = arith.constant 0 : index
    %80 = vector.load %arg16[%c0_67, %c0_68] : memref<8x32xf32, #tpu.memory_space<vmem>>, vector<8x8xf32>
    tpu.vector_store %arg16[%c0_67, %c0_68], %79 {strides = array<i32>} : memref<8x32xf32, #tpu.memory_space<vmem>>, vector<8x8xf32>,
    %81 = vector.extract_strided_slice %77 {offsets = [1, 0, 0], sizes = [1, 8, 8], strides = [1, 1, 1]} : vector<4x8x8xf32> to vector<1x8x8xf32>
    %82 = vector.shape_cast %81 : vector<1x8x8xf32> to vector<8x8xf32>
    %c0_69 = arith.constant 0 : index
    %c8 = arith.constant 8 : index
    %83 = vector.load %arg16[%c0_69, %c8] : memref<8x32xf32, #tpu.memory_space<vmem>>, vector<8x8xf32>
    tpu.vector_store %arg16[%c0_69, %c8], %82 {strides = array<i32>} : memref<8x32xf32, #tpu.memory_space<vmem>>, vector<8x8xf32>,
    %84 = vector.extract_strided_slice %77 {offsets = [2, 0, 0], sizes = [1, 8, 8], strides = [1, 1, 1]} : vector<4x8x8xf32> to vector<1x8x8xf32>
    %85 = vector.shape_cast %84 : vector<1x8x8xf32> to vector<8x8xf32>
    %c0_70 = arith.constant 0 : index
    %c16 = arith.constant 16 : index
    %86 = vector.load %arg16[%c0_70, %c16] : memref<8x32xf32, #tpu.memory_space<vmem>>, vector<8x8xf32>
    tpu.vector_store %arg16[%c0_70, %c16], %85 {strides = array<i32>} : memref<8x32xf32, #tpu.memory_space<vmem>>, vector<8x8xf32>,
    %87 = vector.extract_strided_slice %77 {offsets = [3, 0, 0], sizes = [1, 8, 8], strides = [1, 1, 1]} : vector<4x8x8xf32> to vector<1x8x8xf32>
    %88 = vector.shape_cast %87 : vector<1x8x8xf32> to vector<8x8xf32>
    %c0_71 = arith.constant 0 : index
    %c24 = arith.constant 24 : index
    %89 = vector.load %arg16[%c0_71, %c24] : memref<8x32xf32, #tpu.memory_space<vmem>>, vector<8x8xf32>
    tpu.vector_store %arg16[%c0_71, %c24], %88 {strides = array<i32>} : memref<8x32xf32, #tpu.memory_space<vmem>>, vector<8x8xf32>,
    %c0_72 = arith.constant 0 : index
    %c0_73 = arith.constant 0 : index
    %90 = vector.load %arg16[%c0_72, %c0_73] : memref<8x32xf32, #tpu.memory_space<vmem>>, vector<8x32xf32>
    %91 = arith.truncf %90 : vector<8x32xf32> to vector<8x32xbf16>
    %c0_74 = arith.constant 0 : index
    %c0_75 = arith.constant 0 : index
    %92 = vector.load %arg4[%c0_74, %c0_75] : memref<32x32xbf16, #tpu.memory_space<vmem>>, vector<32x32xbf16>
    %cst_76 = arith.constant dense<0.000000e+00> : vector<8x32xf32>
    %93 = tpu.matmul %91, %92, %cst_76 {dimension_numbers = #tpu.dot_dimension_numbers<[1], [0], [0], [1], [0, 0, 1, 1], [], []>} : vector<8x32xbf16>, vector<32x32xbf16>, vector<8x32xf32> -> vector<8x32xf32>
    %c0_77 = arith.constant 0 : index
    %c0_78 = arith.constant 0 : index
    %94 = vector.load %arg5[%c0_77, %c0_78] : memref<1x32xf32, #tpu.memory_space<vmem>>, vector<1x32xf32>
    %95 = vector.broadcast %94 : vector<1x32xf32> to vector<8x32xf32>
    %96 = arith.addf %93, %95 : vector<8x32xf32>
    %97 = arith.addf %2, %96 : vector<8x32xf32>
    %cst_79 = arith.constant dense<0.000000e+00> : vector<8xf32>
    %98 = vector.multi_reduction <add>, %97, %cst_79 [1] : vector<8x32xf32> to vector<8xf32>
    %99 = vector.shape_cast %98 : vector<8xf32> to vector<8x1xf32>
    %cst_80 = arith.constant 3.200000e+01 : f32
    %100 = vector.broadcast %cst_80 : f32 to vector<8x1xf32>
    %101 = arith.divf %99, %100 : vector<8x1xf32>
    %102 = vector.broadcast %101 : vector<8x1xf32> to vector<8x32xf32>
    %103 = arith.subf %97, %102 : vector<8x32xf32>
    %104 = arith.mulf %103, %103 : vector<8x32xf32>
    %cst_81 = arith.constant dense<0.000000e+00> : vector<8xf32>
    %105 = vector.multi_reduction <add>, %104, %cst_81 [1] : vector<8x32xf32> to vector<8xf32>
    %106 = vector.shape_cast %105 : vector<8xf32> to vector<8x1xf32>
    %cst_82 = arith.constant 3.200000e+01 : f32
    %107 = vector.broadcast %cst_82 : f32 to vector<8x1xf32>
    %108 = arith.divf %106, %107 : vector<8x1xf32>
    %109 = vector.broadcast %101 : vector<8x1xf32> to vector<8x32xf32>
    %110 = arith.subf %97, %109 : vector<8x32xf32>
    %cst_83 = arith.constant 9.99999974E-6 : f32
    %111 = vector.broadcast %cst_83 : f32 to vector<8x1xf32>
    %112 = arith.addf %108, %111 : vector<8x1xf32>
    %113 = math.rsqrt %112 : vector<8x1xf32>
    %114 = vector.broadcast %113 : vector<8x1xf32> to vector<8x32xf32>
    %115 = arith.mulf %110, %114 : vector<8x32xf32>
    %c0_84 = arith.constant 0 : index
    %c0_85 = arith.constant 0 : index
    %116 = vector.load %arg10[%c0_84, %c0_85] : memref<1x32xf32, #tpu.memory_space<vmem>>, vector<1x32xf32>
    %117 = vector.broadcast %116 : vector<1x32xf32> to vector<8x32xf32>
    %118 = arith.mulf %115, %117 : vector<8x32xf32>
    %c0_86 = arith.constant 0 : index
    %c0_87 = arith.constant 0 : index
    %119 = vector.load %arg11[%c0_86, %c0_87] : memref<1x32xf32, #tpu.memory_space<vmem>>, vector<1x32xf32>
    %120 = vector.broadcast %119 : vector<1x32xf32> to vector<8x32xf32>
    %121 = arith.addf %118, %120 : vector<8x32xf32>
    %122 = arith.truncf %121 : vector<8x32xf32> to vector<8x32xbf16>
    %c0_88 = arith.constant 0 : index
    %c0_89 = arith.constant 0 : index
    %123 = vector.load %arg6[%c0_88, %c0_89] : memref<32x64xbf16, #tpu.memory_space<vmem>>, vector<32x64xbf16>
    %cst_90 = arith.constant dense<0.000000e+00> : vector<8x64xf32>
    %124 = tpu.matmul %122, %123, %cst_90 {dimension_numbers = #tpu.dot_dimension_numbers<[1], [0], [0], [1], [0, 0, 1, 1], [], []>} : vector<8x32xbf16>, vector<32x64xbf16>, vector<8x64xf32> -> vector<8x64xf32>
    %c0_91 = arith.constant 0 : index
    %c0_92 = arith.constant 0 : index
    %125 = vector.load %arg7[%c0_91, %c0_92] : memref<1x64xf32, #tpu.memory_space<vmem>>, vector<1x64xf32>
    %126 = vector.broadcast %125 : vector<1x64xf32> to vector<8x64xf32>
    %127 = arith.addf %124, %126 : vector<8x64xf32>
    %128 = arith.mulf %127, %127 : vector<8x64xf32>
    %129 = arith.mulf %127, %128 : vector<8x64xf32>
    %cst_93 = arith.constant 4.471500e-02 : f32
    %130 = vector.broadcast %cst_93 : f32 to vector<8x64xf32>
    %131 = arith.mulf %130, %129 : vector<8x64xf32>
    %132 = arith.addf %127, %131 : vector<8x64xf32>
    %cst_94 = arith.constant 0.797884583 : f32
    %133 = vector.broadcast %cst_94 : f32 to vector<8x64xf32>
    %134 = arith.mulf %133, %132 : vector<8x64xf32>
    %135 = math.tanh %134 : vector<8x64xf32>
    %cst_95 = arith.constant 1.000000e+00 : f32
    %136 = vector.broadcast %cst_95 : f32 to vector<8x64xf32>
    %137 = arith.addf %136, %135 : vector<8x64xf32>
    %cst_96 = arith.constant 5.000000e-01 : f32
    %138 = vector.broadcast %cst_96 : f32 to vector<8x64xf32>
    %139 = arith.mulf %138, %137 : vector<8x64xf32>
    %140 = arith.mulf %127, %139 : vector<8x64xf32>
    %141 = arith.truncf %140 : vector<8x64xf32> to vector<8x64xbf16>
    %c0_97 = arith.constant 0 : index
    %c0_98 = arith.constant 0 : index
    %142 = vector.load %arg8[%c0_97, %c0_98] : memref<64x32xbf16, #tpu.memory_space<vmem>>, vector<64x32xbf16>
    %cst_99 = arith.constant dense<0.000000e+00> : vector<8x32xf32>
    %143 = tpu.matmul %141, %142, %cst_99 {dimension_numbers = #tpu.dot_dimension_numbers<[1], [0], [0], [1], [0, 0, 1, 1], [], []>} : vector<8x64xbf16>, vector<64x32xbf16>, vector<8x32xf32> -> vector<8x32xf32>
    %c0_100 = arith.constant 0 : index
    %c0_101 = arith.constant 0 : index
    %144 = vector.load %arg9[%c0_100, %c0_101] : memref<1x32xf32, #tpu.memory_space<vmem>>, vector<1x32xf32>
    %145 = vector.broadcast %144 : vector<1x32xf32> to vector<8x32xf32>
    %146 = arith.addf %143, %145 : vector<8x32xf32>
    %147 = arith.addf %121, %146 : vector<8x32xf32>
    %cst_102 = arith.constant dense<0.000000e+00> : vector<8xf32>
    %148 = vector.multi_reduction <add>, %147, %cst_102 [1] : vector<8x32xf32> to vector<8xf32>
    %149 = vector.shape_cast %148 : vector<8xf32> to vector<8x1xf32>
    %cst_103 = arith.constant 3.200000e+01 : f32
    %150 = vector.broadcast %cst_103 : f32 to vector<8x1xf32>
    %151 = arith.divf %149, %150 : vector<8x1xf32>
    %152 = vector.broadcast %151 : vector<8x1xf32> to vector<8x32xf32>
    %153 = arith.subf %147, %152 : vector<8x32xf32>
    %154 = arith.mulf %153, %153 : vector<8x32xf32>
    %cst_104 = arith.constant dense<0.000000e+00> : vector<8xf32>
    %155 = vector.multi_reduction <add>, %154, %cst_104 [1] : vector<8x32xf32> to vector<8xf32>
    %156 = vector.shape_cast %155 : vector<8xf32> to vector<8x1xf32>
    %cst_105 = arith.constant 3.200000e+01 : f32
    %157 = vector.broadcast %cst_105 : f32 to vector<8x1xf32>
    %158 = arith.divf %156, %157 : vector<8x1xf32>
    %159 = vector.broadcast %151 : vector<8x1xf32> to vector<8x32xf32>
    %160 = arith.subf %147, %159 : vector<8x32xf32>
    %cst_106 = arith.constant 9.99999974E-6 : f32
    %161 = vector.broadcast %cst_106 : f32 to vector<8x1xf32>
    %162 = arith.addf %158, %161 : vector<8x1xf32>
    %163 = math.rsqrt %162 : vector<8x1xf32>
    %164 = vector.broadcast %163 : vector<8x1xf32> to vector<8x32xf32>
    %165 = arith.mulf %160, %164 : vector<8x32xf32>
    %c0_107 = arith.constant 0 : index
    %c0_108 = arith.constant 0 : index
    %166 = vector.load %arg12[%c0_107, %c0_108] : memref<1x32xf32, #tpu.memory_space<vmem>>, vector<1x32xf32>
    %167 = vector.broadcast %166 : vector<1x32xf32> to vector<8x32xf32>
    %168 = arith.mulf %165, %167 : vector<8x32xf32>
    %c0_109 = arith.constant 0 : index
    %c0_110 = arith.constant 0 : index
    %169 = vector.load %arg13[%c0_109, %c0_110] : memref<1x32xf32, #tpu.memory_space<vmem>>, vector<1x32xf32>
    %170 = vector.broadcast %169 : vector<1x32xf32> to vector<8x32xf32>
    %171 = arith.addf %168, %170 : vector<8x32xf32>
    %c0_111 = arith.constant 0 : index
    %c0_112 = arith.constant 0 : index
    %c0_113 = arith.constant 0 : index
    %172 = vector.load %arg14[%c0_111, %c0_112, %c0_113] : memref<1x8x32xf32, #tpu.memory_space<vmem>>, vector<1x8x32xf32>
    %173 = vector.shape_cast %172 : vector<1x8x32xf32> to vector<8x32xf32>
    %174 = vector.shape_cast %171 : vector<8x32xf32> to vector<1x8x32xf32>
    tpu.vector_store %arg14[%c0_111, %c0_112, %c0_113], %174 {strides = array<i32>} : memref<1x8x32xf32, #tpu.memory_space<vmem>>, vector<1x8x32xf32>,
    return
  }
  func.func @transform_0(%arg0: i32) -> (i32, i32, i32) {
    %c0_i32 = arith.constant 0 : i32
    %c0_i32_0 = arith.constant 0 : i32
    %c0_i32_1 = arith.constant 0 : i32
    return %arg0, %c0_i32, %c0_i32_0 : i32, i32, i32
  }
  func.func @transform_1(%arg0: i32) -> (i32, i32) {
    %c0_i32 = arith.constant 0 : i32
    %c0_i32_0 = arith.constant 0 : i32
    %c0_i32_1 = arith.constant 0 : i32
    return %c0_i32, %c0_i32_0 : i32, i32
  }
  func.func @transform_2(%arg0: i32) -> (i32, i32) {
    %c0_i32 = arith.constant 0 : i32
    %c0_i32_0 = arith.constant 0 : i32
    %c0_i32_1 = arith.constant 0 : i32
    return %c0_i32, %c0_i32_0 : i32, i32
  }
  func.func @transform_3(%arg0: i32) -> (i32, i32) {
    %c0_i32 = arith.constant 0 : i32
    %c0_i32_0 = arith.constant 0 : i32
    %c0_i32_1 = arith.constant 0 : i32
    return %c0_i32, %c0_i32_0 : i32, i32
  }
  func.func @transform_4(%arg0: i32) -> (i32, i32) {
    %c0_i32 = arith.constant 0 : i32
    %c0_i32_0 = arith.constant 0 : i32
    %c0_i32_1 = arith.constant 0 : i32
    return %c0_i32, %c0_i32_0 : i32, i32
  }
  func.func @transform_5(%arg0: i32) -> (i32, i32) {
    %c0_i32 = arith.constant 0 : i32
    %c0_i32_0 = arith.constant 0 : i32
    %c0_i32_1 = arith.constant 0 : i32
    return %c0_i32, %c0_i32_0 : i32, i32
  }
  func.func @transform_6(%arg0: i32) -> (i32, i32) {
    %c0_i32 = arith.constant 0 : i32
    %c0_i32_0 = arith.constant 0 : i32
    %c0_i32_1 = arith.constant 0 : i32
    return %c0_i32, %c0_i32_0 : i32, i32
  }
  func.func @transform_7(%arg0: i32) -> (i32, i32) {
    %c0_i32 = arith.constant 0 : i32
    %c0_i32_0 = arith.constant 0 : i32
    %c0_i32_1 = arith.constant 0 : i32
    return %c0_i32, %c0_i32_0 : i32, i32
  }
  func.func @transform_8(%arg0: i32) -> (i32, i32) {
    %c0_i32 = arith.constant 0 : i32
    %c0_i32_0 = arith.constant 0 : i32
    %c0_i32_1 = arith.constant 0 : i32
    return %c0_i32, %c0_i32_0 : i32, i32
  }
  func.func @transform_9(%arg0: i32) -> (i32, i32) {
    %c0_i32 = arith.constant 0 : i32
    %c0_i32_0 = arith.constant 0 : i32
    %c0_i32_1 = arith.constant 0 : i32
    return %c0_i32, %c0_i32_0 : i32, i32
  }
  func.func @transform_10(%arg0: i32) -> (i32, i32) {
    %c0_i32 = arith.constant 0 : i32
    %c0_i32_0 = arith.constant 0 : i32
    %c0_i32_1 = arith.constant 0 : i32
    return %c0_i32, %c0_i32_0 : i32, i32
  }
  func.func @transform_11(%arg0: i32) -> (i32, i32) {
    %c0_i32 = arith.constant 0 : i32
    %c0_i32_0 = arith.constant 0 : i32
    %c0_i32_1 = arith.constant 0 : i32
    return %c0_i32, %c0_i32_0 : i32, i32
  }
  func.func @transform_12(%arg0: i32) -> (i32, i32) {
    %c0_i32 = arith.constant 0 : i32
    %c0_i32_0 = arith.constant 0 : i32
    %c0_i32_1 = arith.constant 0 : i32
    return %c0_i32, %c0_i32_0 : i32, i32
  }
  func.func @transform_13(%arg0: i32) -> (i32, i32, i32) {
    %c0_i32 = arith.constant 0 : i32
    %c0_i32_0 = arith.constant 0 : i32
    %c0_i32_1 = arith.constant 0 : i32
    return %arg0, %c0_i32, %c0_i32_0 : i32, i32, i32
  }
}

module attributes {stable_mosaic.version = 11 : i64} {
  func.func @encoder_layer_kernel(%arg0: i32, %arg1: memref<1x4x32xbf16, #tpu.memory_space<vmem>>, %arg2: memref<32x96xbf16, #tpu.memory_space<vmem>>, %arg3: memref<1x96xf32, #tpu.memory_space<vmem>>, %arg4: memref<32x32xbf16, #tpu.memory_space<vmem>>, %arg5: memref<1x32xf32, #tpu.memory_space<vmem>>, %arg6: memref<32x64xbf16, #tpu.memory_space<vmem>>, %arg7: memref<1x64xf32, #tpu.memory_space<vmem>>, %arg8: memref<64x32xbf16, #tpu.memory_space<vmem>>, %arg9: memref<1x32xf32, #tpu.memory_space<vmem>>, %arg10: memref<1x32xf32, #tpu.memory_space<vmem>>, %arg11: memref<1x32xf32, #tpu.memory_space<vmem>>, %arg12: memref<1x32xf32, #tpu.memory_space<vmem>>, %arg13: memref<1x32xf32, #tpu.memory_space<vmem>>, %arg14: memref<1x4x32xf32, #tpu.memory_space<vmem>>, %arg15: memref<3x4x4x8xf32, #tpu.memory_space<vmem>>, %arg16: memref<4x32xf32, #tpu.memory_space<vmem>>) attributes {dimension_semantics = [#tpu.dimension_semantics<parallel>], iteration_bounds = array<i64: 2>, scalar_prefetch = 0 : i64, scratch_operands = 2 : i64, tpu.core_type = #tpu.core_type<tc>, window_params = [{transform_indices = @transform_0, window_bounds = array<i64: 1, 4, 32>}, {pipeline_mode = #tpu.pipeline_mode<synchronous>, transform_indices = @transform_1, window_bounds = array<i64: 32, 96>}, {pipeline_mode = #tpu.pipeline_mode<synchronous>, transform_indices = @transform_2, window_bounds = array<i64: 1, 96>}, {pipeline_mode = #tpu.pipeline_mode<synchronous>, transform_indices = @transform_3, window_bounds = array<i64: 32, 32>}, {pipeline_mode = #tpu.pipeline_mode<synchronous>, transform_indices = @transform_4, window_bounds = array<i64: 1, 32>}, {pipeline_mode = #tpu.pipeline_mode<synchronous>, transform_indices = @transform_5, window_bounds = array<i64: 32, 64>}, {pipeline_mode = #tpu.pipeline_mode<synchronous>, transform_indices = @transform_6, window_bounds = array<i64: 1, 64>}, {pipeline_mode = #tpu.pipeline_mode<synchronous>, transform_indices = @transform_7, window_bounds = array<i64: 64, 32>}, {pipeline_mode = #tpu.pipeline_mode<synchronous>, transform_indices = @transform_8, window_bounds = array<i64: 1, 32>}, {pipeline_mode = #tpu.pipeline_mode<synchronous>, transform_indices = @transform_9, window_bounds = array<i64: 1, 32>}, {pipeline_mode = #tpu.pipeline_mode<synchronous>, transform_indices = @transform_10, window_bounds = array<i64: 1, 32>}, {pipeline_mode = #tpu.pipeline_mode<synchronous>, transform_indices = @transform_11, window_bounds = array<i64: 1, 32>}, {pipeline_mode = #tpu.pipeline_mode<synchronous>, transform_indices = @transform_12, window_bounds = array<i64: 1, 32>}, {transform_indices = @transform_13, window_bounds = array<i64: 1, 4, 32>}]} {
    %c0 = arith.constant 0 : index
    %c0_0 = arith.constant 0 : index
    %c0_1 = arith.constant 0 : index
    %0 = vector.load %arg1[%c0, %c0_0, %c0_1] : memref<1x4x32xbf16, #tpu.memory_space<vmem>>, vector<1x4x32xbf16>
    %1 = vector.shape_cast %0 : vector<1x4x32xbf16> to vector<4x32xbf16>
    %2 = arith.extf %1 : vector<4x32xbf16> to vector<4x32xf32>
    %c0_2 = arith.constant 0 : index
    %c0_3 = arith.constant 0 : index
    %3 = vector.load %arg2[%c0_2, %c0_3] : memref<32x96xbf16, #tpu.memory_space<vmem>>, vector<32x96xbf16>
    %cst = arith.constant dense<0.000000e+00> : vector<4x96xf32>
    %4 = tpu.matmul %1, %3, %cst {dimension_numbers = #tpu.dot_dimension_numbers<[1], [0], [0], [1], [0, 0, 1, 1], [], []>} : vector<4x32xbf16>, vector<32x96xbf16>, vector<4x96xf32> -> vector<4x96xf32>
    %c0_4 = arith.constant 0 : index
    %c0_5 = arith.constant 0 : index
    %5 = vector.load %arg3[%c0_4, %c0_5] : memref<1x96xf32, #tpu.memory_space<vmem>>, vector<1x96xf32>
    %6 = vector.broadcast %5 : vector<1x96xf32> to vector<4x96xf32>
    %7 = arith.addf %4, %6 : vector<4x96xf32>
    %8 = vector.extract_strided_slice %7 {offsets = [0, 0], sizes = [4, 8], strides = [1, 1]} : vector<4x96xf32> to vector<4x8xf32>
    %c0_6 = arith.constant 0 : index
    %c0_7 = arith.constant 0 : index
    %c0_8 = arith.constant 0 : index
    %c0_9 = arith.constant 0 : index
    %9 = vector.load %arg15[%c0_6, %c0_7, %c0_8, %c0_9] : memref<3x4x4x8xf32, #tpu.memory_space<vmem>>, vector<1x1x4x8xf32>
    %10 = vector.shape_cast %9 : vector<1x1x4x8xf32> to vector<4x8xf32>
    %11 = vector.shape_cast %8 : vector<4x8xf32> to vector<1x1x4x8xf32>
    tpu.vector_store %arg15[%c0_6, %c0_7, %c0_8, %c0_9], %11 {strides = array<i32>} : memref<3x4x4x8xf32, #tpu.memory_space<vmem>>, vector<1x1x4x8xf32>,
    %12 = vector.extract_strided_slice %7 {offsets = [0, 32], sizes = [4, 8], strides = [1, 1]} : vector<4x96xf32> to vector<4x8xf32>
    %c1 = arith.constant 1 : index
    %c0_10 = arith.constant 0 : index
    %c0_11 = arith.constant 0 : index
    %c0_12 = arith.constant 0 : index
    %13 = vector.load %arg15[%c1, %c0_10, %c0_11, %c0_12] : memref<3x4x4x8xf32, #tpu.memory_space<vmem>>, vector<1x1x4x8xf32>
    %14 = vector.shape_cast %13 : vector<1x1x4x8xf32> to vector<4x8xf32>
    %15 = vector.shape_cast %12 : vector<4x8xf32> to vector<1x1x4x8xf32>
    tpu.vector_store %arg15[%c1, %c0_10, %c0_11, %c0_12], %15 {strides = array<i32>} : memref<3x4x4x8xf32, #tpu.memory_space<vmem>>, vector<1x1x4x8xf32>,
    %16 = vector.extract_strided_slice %7 {offsets = [0, 64], sizes = [4, 8], strides = [1, 1]} : vector<4x96xf32> to vector<4x8xf32>
    %c2 = arith.constant 2 : index
    %c0_13 = arith.constant 0 : index
    %c0_14 = arith.constant 0 : index
    %c0_15 = arith.constant 0 : index
    %17 = vector.load %arg15[%c2, %c0_13, %c0_14, %c0_15] : memref<3x4x4x8xf32, #tpu.memory_space<vmem>>, vector<1x1x4x8xf32>
    %18 = vector.shape_cast %17 : vector<1x1x4x8xf32> to vector<4x8xf32>
    %19 = vector.shape_cast %16 : vector<4x8xf32> to vector<1x1x4x8xf32>
    tpu.vector_store %arg15[%c2, %c0_13, %c0_14, %c0_15], %19 {strides = array<i32>} : memref<3x4x4x8xf32, #tpu.memory_space<vmem>>, vector<1x1x4x8xf32>,
    %20 = vector.extract_strided_slice %7 {offsets = [0, 8], sizes = [4, 8], strides = [1, 1]} : vector<4x96xf32> to vector<4x8xf32>
    %c0_16 = arith.constant 0 : index
    %c1_17 = arith.constant 1 : index
    %c0_18 = arith.constant 0 : index
    %c0_19 = arith.constant 0 : index
    %21 = vector.load %arg15[%c0_16, %c1_17, %c0_18, %c0_19] : memref<3x4x4x8xf32, #tpu.memory_space<vmem>>, vector<1x1x4x8xf32>
    %22 = vector.shape_cast %21 : vector<1x1x4x8xf32> to vector<4x8xf32>
    %23 = vector.shape_cast %20 : vector<4x8xf32> to vector<1x1x4x8xf32>
    tpu.vector_store %arg15[%c0_16, %c1_17, %c0_18, %c0_19], %23 {strides = array<i32>} : memref<3x4x4x8xf32, #tpu.memory_space<vmem>>, vector<1x1x4x8xf32>,
    %24 = vector.extract_strided_slice %7 {offsets = [0, 40], sizes = [4, 8], strides = [1, 1]} : vector<4x96xf32> to vector<4x8xf32>
    %c1_20 = arith.constant 1 : index
    %c1_21 = arith.constant 1 : index
    %c0_22 = arith.constant 0 : index
    %c0_23 = arith.constant 0 : index
    %25 = vector.load %arg15[%c1_20, %c1_21, %c0_22, %c0_23] : memref<3x4x4x8xf32, #tpu.memory_space<vmem>>, vector<1x1x4x8xf32>
    %26 = vector.shape_cast %25 : vector<1x1x4x8xf32> to vector<4x8xf32>
    %27 = vector.shape_cast %24 : vector<4x8xf32> to vector<1x1x4x8xf32>
    tpu.vector_store %arg15[%c1_20, %c1_21, %c0_22, %c0_23], %27 {strides = array<i32>} : memref<3x4x4x8xf32, #tpu.memory_space<vmem>>, vector<1x1x4x8xf32>,
    %28 = vector.extract_strided_slice %7 {offsets = [0, 72], sizes = [4, 8], strides = [1, 1]} : vector<4x96xf32> to vector<4x8xf32>
    %c2_24 = arith.constant 2 : index
    %c1_25 = arith.constant 1 : index
    %c0_26 = arith.constant 0 : index
    %c0_27 = arith.constant 0 : index
    %29 = vector.load %arg15[%c2_24, %c1_25, %c0_26, %c0_27] : memref<3x4x4x8xf32, #tpu.memory_space<vmem>>, vector<1x1x4x8xf32>
    %30 = vector.shape_cast %29 : vector<1x1x4x8xf32> to vector<4x8xf32>
    %31 = vector.shape_cast %28 : vector<4x8xf32> to vector<1x1x4x8xf32>
    tpu.vector_store %arg15[%c2_24, %c1_25, %c0_26, %c0_27], %31 {strides = array<i32>} : memref<3x4x4x8xf32, #tpu.memory_space<vmem>>, vector<1x1x4x8xf32>,
    %32 = vector.extract_strided_slice %7 {offsets = [0, 16], sizes = [4, 8], strides = [1, 1]} : vector<4x96xf32> to vector<4x8xf32>
    %c0_28 = arith.constant 0 : index
    %c2_29 = arith.constant 2 : index
    %c0_30 = arith.constant 0 : index
    %c0_31 = arith.constant 0 : index
    %33 = vector.load %arg15[%c0_28, %c2_29, %c0_30, %c0_31] : memref<3x4x4x8xf32, #tpu.memory_space<vmem>>, vector<1x1x4x8xf32>
    %34 = vector.shape_cast %33 : vector<1x1x4x8xf32> to vector<4x8xf32>
    %35 = vector.shape_cast %32 : vector<4x8xf32> to vector<1x1x4x8xf32>
    tpu.vector_store %arg15[%c0_28, %c2_29, %c0_30, %c0_31], %35 {strides = array<i32>} : memref<3x4x4x8xf32, #tpu.memory_space<vmem>>, vector<1x1x4x8xf32>,
    %36 = vector.extract_strided_slice %7 {offsets = [0, 48], sizes = [4, 8], strides = [1, 1]} : vector<4x96xf32> to vector<4x8xf32>
    %c1_32 = arith.constant 1 : index
    %c2_33 = arith.constant 2 : index
    %c0_34 = arith.constant 0 : index
    %c0_35 = arith.constant 0 : index
    %37 = vector.load %arg15[%c1_32, %c2_33, %c0_34, %c0_35] : memref<3x4x4x8xf32, #tpu.memory_space<vmem>>, vector<1x1x4x8xf32>
    %38 = vector.shape_cast %37 : vector<1x1x4x8xf32> to vector<4x8xf32>
    %39 = vector.shape_cast %36 : vector<4x8xf32> to vector<1x1x4x8xf32>
    tpu.vector_store %arg15[%c1_32, %c2_33, %c0_34, %c0_35], %39 {strides = array<i32>} : memref<3x4x4x8xf32, #tpu.memory_space<vmem>>, vector<1x1x4x8xf32>,
    %40 = vector.extract_strided_slice %7 {offsets = [0, 80], sizes = [4, 8], strides = [1, 1]} : vector<4x96xf32> to vector<4x8xf32>
    %c2_36 = arith.constant 2 : index
    %c2_37 = arith.constant 2 : index
    %c0_38 = arith.constant 0 : index
    %c0_39 = arith.constant 0 : index
    %41 = vector.load %arg15[%c2_36, %c2_37, %c0_38, %c0_39] : memref<3x4x4x8xf32, #tpu.memory_space<vmem>>, vector<1x1x4x8xf32>
    %42 = vector.shape_cast %41 : vector<1x1x4x8xf32> to vector<4x8xf32>
    %43 = vector.shape_cast %40 : vector<4x8xf32> to vector<1x1x4x8xf32>
    tpu.vector_store %arg15[%c2_36, %c2_37, %c0_38, %c0_39], %43 {strides = array<i32>} : memref<3x4x4x8xf32, #tpu.memory_space<vmem>>, vector<1x1x4x8xf32>,
    %44 = vector.extract_strided_slice %7 {offsets = [0, 24], sizes = [4, 8], strides = [1, 1]} : vector<4x96xf32> to vector<4x8xf32>
    %c0_40 = arith.constant 0 : index
    %c3 = arith.constant 3 : index
    %c0_41 = arith.constant 0 : index
    %c0_42 = arith.constant 0 : index
    %45 = vector.load %arg15[%c0_40, %c3, %c0_41, %c0_42] : memref<3x4x4x8xf32, #tpu.memory_space<vmem>>, vector<1x1x4x8xf32>
    %46 = vector.shape_cast %45 : vector<1x1x4x8xf32> to vector<4x8xf32>
    %47 = vector.shape_cast %44 : vector<4x8xf32> to vector<1x1x4x8xf32>
    tpu.vector_store %arg15[%c0_40, %c3, %c0_41, %c0_42], %47 {strides = array<i32>} : memref<3x4x4x8xf32, #tpu.memory_space<vmem>>, vector<1x1x4x8xf32>,
    %48 = vector.extract_strided_slice %7 {offsets = [0, 56], sizes = [4, 8], strides = [1, 1]} : vector<4x96xf32> to vector<4x8xf32>
    %c1_43 = arith.constant 1 : index
    %c3_44 = arith.constant 3 : index
    %c0_45 = arith.constant 0 : index
    %c0_46 = arith.constant 0 : index
    %49 = vector.load %arg15[%c1_43, %c3_44, %c0_45, %c0_46] : memref<3x4x4x8xf32, #tpu.memory_space<vmem>>, vector<1x1x4x8xf32>
    %50 = vector.shape_cast %49 : vector<1x1x4x8xf32> to vector<4x8xf32>
    %51 = vector.shape_cast %48 : vector<4x8xf32> to vector<1x1x4x8xf32>
    tpu.vector_store %arg15[%c1_43, %c3_44, %c0_45, %c0_46], %51 {strides = array<i32>} : memref<3x4x4x8xf32, #tpu.memory_space<vmem>>, vector<1x1x4x8xf32>,
    %52 = vector.extract_strided_slice %7 {offsets = [0, 88], sizes = [4, 8], strides = [1, 1]} : vector<4x96xf32> to vector<4x8xf32>
    %c2_47 = arith.constant 2 : index
    %c3_48 = arith.constant 3 : index
    %c0_49 = arith.constant 0 : index
    %c0_50 = arith.constant 0 : index
    %53 = vector.load %arg15[%c2_47, %c3_48, %c0_49, %c0_50] : memref<3x4x4x8xf32, #tpu.memory_space<vmem>>, vector<1x1x4x8xf32>
    %54 = vector.shape_cast %53 : vector<1x1x4x8xf32> to vector<4x8xf32>
    %55 = vector.shape_cast %52 : vector<4x8xf32> to vector<1x1x4x8xf32>
    tpu.vector_store %arg15[%c2_47, %c3_48, %c0_49, %c0_50], %55 {strides = array<i32>} : memref<3x4x4x8xf32, #tpu.memory_space<vmem>>, vector<1x1x4x8xf32>,
    %c0_51 = arith.constant 0 : index
    %c0_52 = arith.constant 0 : index
    %c0_53 = arith.constant 0 : index
    %c0_54 = arith.constant 0 : index
    %56 = vector.load %arg15[%c0_51, %c0_52, %c0_53, %c0_54] : memref<3x4x4x8xf32, #tpu.memory_space<vmem>>, vector<1x4x4x8xf32>
    %57 = vector.shape_cast %56 : vector<1x4x4x8xf32> to vector<4x4x8xf32>
    %58 = arith.truncf %57 : vector<4x4x8xf32> to vector<4x4x8xbf16>
    %c1_55 = arith.constant 1 : index
    %c0_56 = arith.constant 0 : index
    %c0_57 = arith.constant 0 : index
    %c0_58 = arith.constant 0 : index
    %59 = vector.load %arg15[%c1_55, %c0_56, %c0_57, %c0_58] : memref<3x4x4x8xf32, #tpu.memory_space<vmem>>, vector<1x4x4x8xf32>
    %60 = vector.shape_cast %59 : vector<1x4x4x8xf32> to vector<4x4x8xf32>
    %61 = arith.truncf %60 : vector<4x4x8xf32> to vector<4x4x8xbf16>
    %c2_59 = arith.constant 2 : index
    %c0_60 = arith.constant 0 : index
    %c0_61 = arith.constant 0 : index
    %c0_62 = arith.constant 0 : index
    %62 = vector.load %arg15[%c2_59, %c0_60, %c0_61, %c0_62] : memref<3x4x4x8xf32, #tpu.memory_space<vmem>>, vector<1x4x4x8xf32>
    %63 = vector.shape_cast %62 : vector<1x4x4x8xf32> to vector<4x4x8xf32>
    %64 = arith.truncf %63 : vector<4x4x8xf32> to vector<4x4x8xbf16>
    "tpu.trace_start"() <{level = 10 : i32, message = "hld,hsd->hls"}> : () -> ()
    %cst_63 = arith.constant dense<0.000000e+00> : vector<4x4x4xf32>
    %65 = tpu.matmul %58, %61, %cst_63 {dimension_numbers = #tpu.dot_dimension_numbers<[2], [2], [1], [1], [0, 0, 0, 1, 1, 1], [0], [0]>} : vector<4x4x8xbf16>, vector<4x4x8xbf16>, vector<4x4x4xf32> -> vector<4x4x4xf32>
    "tpu.trace_stop"() : () -> ()
    %cst_64 = arith.constant dense<0xFF800000> : vector<4x4xf32>
    %66 = vector.multi_reduction <maximumf>, %65, %cst_64 [2] : vector<4x4x4xf32> to vector<4x4xf32>
    %67 = vector.shape_cast %66 : vector<4x4xf32> to vector<4x4x1xf32>
    %68 = vector.broadcast %67 : vector<4x4x1xf32> to vector<4x4x4xf32>
    %69 = arith.subf %65, %68 : vector<4x4x4xf32>
    %70 = math.exp %69 : vector<4x4x4xf32>
    %cst_65 = arith.constant dense<0.000000e+00> : vector<4x4xf32>
    %71 = vector.multi_reduction <add>, %70, %cst_65 [2] : vector<4x4x4xf32> to vector<4x4xf32>
    %72 = vector.shape_cast %71 : vector<4x4xf32> to vector<4x4x1xf32>
    %73 = tpu.reciprocal %72 {approx = true} : vector<4x4x1xf32> -> vector<4x4x1xf32>
    %74 = vector.broadcast %73 : vector<4x4x1xf32> to vector<4x4x4xf32>
    %75 = arith.mulf %70, %74 : vector<4x4x4xf32>
    %76 = arith.truncf %75 : vector<4x4x4xf32> to vector<4x4x4xbf16>
    "tpu.trace_start"() <{level = 10 : i32, message = "hls,hsd->hld"}> : () -> ()
    %cst_66 = arith.constant dense<0.000000e+00> : vector<4x4x8xf32>
    %77 = tpu.matmul %76, %64, %cst_66 {dimension_numbers = #tpu.dot_dimension_numbers<[2], [1], [1], [2], [0, 0, 0, 1, 1, 2], [0], [0]>} : vector<4x4x4xbf16>, vector<4x4x8xbf16>, vector<4x4x8xf32> -> vector<4x4x8xf32>
    "tpu.trace_stop"() : () -> ()
    %78 = vector.extract_strided_slice %77 {offsets = [0, 0, 0], sizes = [1, 4, 8], strides = [1, 1, 1]} : vector<4x4x8xf32> to vector<1x4x8xf32>
    %79 = vector.shape_cast %78 : vector<1x4x8xf32> to vector<4x8xf32>
    %c0_67 = arith.constant 0 : index
    %c0_68 = arith.constant 0 : index
    %80 = vector.load %arg16[%c0_67, %c0_68] : memref<4x32xf32, #tpu.memory_space<vmem>>, vector<4x8xf32>
    tpu.vector_store %arg16[%c0_67, %c0_68], %79 {strides = array<i32>} : memref<4x32xf32, #tpu.memory_space<vmem>>, vector<4x8xf32>,
    %81 = vector.extract_strided_slice %77 {offsets = [1, 0, 0], sizes = [1, 4, 8], strides = [1, 1, 1]} : vector<4x4x8xf32> to vector<1x4x8xf32>
    %82 = vector.shape_cast %81 : vector<1x4x8xf32> to vector<4x8xf32>
    %c0_69 = arith.constant 0 : index
    %c8 = arith.constant 8 : index
    %83 = vector.load %arg16[%c0_69, %c8] : memref<4x32xf32, #tpu.memory_space<vmem>>, vector<4x8xf32>
    tpu.vector_store %arg16[%c0_69, %c8], %82 {strides = array<i32>} : memref<4x32xf32, #tpu.memory_space<vmem>>, vector<4x8xf32>,
    %84 = vector.extract_strided_slice %77 {offsets = [2, 0, 0], sizes = [1, 4, 8], strides = [1, 1, 1]} : vector<4x4x8xf32> to vector<1x4x8xf32>
    %85 = vector.shape_cast %84 : vector<1x4x8xf32> to vector<4x8xf32>
    %c0_70 = arith.constant 0 : index
    %c16 = arith.constant 16 : index
    %86 = vector.load %arg16[%c0_70, %c16] : memref<4x32xf32, #tpu.memory_space<vmem>>, vector<4x8xf32>
    tpu.vector_store %arg16[%c0_70, %c16], %85 {strides = array<i32>} : memref<4x32xf32, #tpu.memory_space<vmem>>, vector<4x8xf32>,
    %87 = vector.extract_strided_slice %77 {offsets = [3, 0, 0], sizes = [1, 4, 8], strides = [1, 1, 1]} : vector<4x4x8xf32> to vector<1x4x8xf32>
    %88 = vector.shape_cast %87 : vector<1x4x8xf32> to vector<4x8xf32>
    %c0_71 = arith.constant 0 : index
    %c24 = arith.constant 24 : index
    %89 = vector.load %arg16[%c0_71, %c24] : memref<4x32xf32, #tpu.memory_space<vmem>>, vector<4x8xf32>
    tpu.vector_store %arg16[%c0_71, %c24], %88 {strides = array<i32>} : memref<4x32xf32, #tpu.memory_space<vmem>>, vector<4x8xf32>,
    %c0_72 = arith.constant 0 : index
    %c0_73 = arith.constant 0 : index
    %90 = vector.load %arg16[%c0_72, %c0_73] : memref<4x32xf32, #tpu.memory_space<vmem>>, vector<4x32xf32>
    %91 = arith.truncf %90 : vector<4x32xf32> to vector<4x32xbf16>
    %c0_74 = arith.constant 0 : index
    %c0_75 = arith.constant 0 : index
    %92 = vector.load %arg4[%c0_74, %c0_75] : memref<32x32xbf16, #tpu.memory_space<vmem>>, vector<32x32xbf16>
    %cst_76 = arith.constant dense<0.000000e+00> : vector<4x32xf32>
    %93 = tpu.matmul %91, %92, %cst_76 {dimension_numbers = #tpu.dot_dimension_numbers<[1], [0], [0], [1], [0, 0, 1, 1], [], []>} : vector<4x32xbf16>, vector<32x32xbf16>, vector<4x32xf32> -> vector<4x32xf32>
    %c0_77 = arith.constant 0 : index
    %c0_78 = arith.constant 0 : index
    %94 = vector.load %arg5[%c0_77, %c0_78] : memref<1x32xf32, #tpu.memory_space<vmem>>, vector<1x32xf32>
    %95 = vector.broadcast %94 : vector<1x32xf32> to vector<4x32xf32>
    %96 = arith.addf %93, %95 : vector<4x32xf32>
    %97 = arith.addf %2, %96 : vector<4x32xf32>
    %cst_79 = arith.constant dense<0.000000e+00> : vector<4xf32>
    %98 = vector.multi_reduction <add>, %97, %cst_79 [1] : vector<4x32xf32> to vector<4xf32>
    %99 = vector.shape_cast %98 : vector<4xf32> to vector<4x1xf32>
    %cst_80 = arith.constant 3.200000e+01 : f32
    %100 = vector.broadcast %cst_80 : f32 to vector<4x1xf32>
    %101 = arith.divf %99, %100 : vector<4x1xf32>
    %102 = vector.broadcast %101 : vector<4x1xf32> to vector<4x32xf32>
    %103 = arith.subf %97, %102 : vector<4x32xf32>
    %104 = arith.mulf %103, %103 : vector<4x32xf32>
    %cst_81 = arith.constant dense<0.000000e+00> : vector<4xf32>
    %105 = vector.multi_reduction <add>, %104, %cst_81 [1] : vector<4x32xf32> to vector<4xf32>
    %106 = vector.shape_cast %105 : vector<4xf32> to vector<4x1xf32>
    %cst_82 = arith.constant 3.200000e+01 : f32
    %107 = vector.broadcast %cst_82 : f32 to vector<4x1xf32>
    %108 = arith.divf %106, %107 : vector<4x1xf32>
    %109 = vector.broadcast %101 : vector<4x1xf32> to vector<4x32xf32>
    %110 = arith.subf %97, %109 : vector<4x32xf32>
    %cst_83 = arith.constant 9.99999974E-6 : f32
    %111 = vector.broadcast %cst_83 : f32 to vector<4x1xf32>
    %112 = arith.addf %108, %111 : vector<4x1xf32>
    %113 = math.rsqrt %112 : vector<4x1xf32>
    %114 = vector.broadcast %113 : vector<4x1xf32> to vector<4x32xf32>
    %115 = arith.mulf %110, %114 : vector<4x32xf32>
    %c0_84 = arith.constant 0 : index
    %c0_85 = arith.constant 0 : index
    %116 = vector.load %arg10[%c0_84, %c0_85] : memref<1x32xf32, #tpu.memory_space<vmem>>, vector<1x32xf32>
    %117 = vector.broadcast %116 : vector<1x32xf32> to vector<4x32xf32>
    %118 = arith.mulf %115, %117 : vector<4x32xf32>
    %c0_86 = arith.constant 0 : index
    %c0_87 = arith.constant 0 : index
    %119 = vector.load %arg11[%c0_86, %c0_87] : memref<1x32xf32, #tpu.memory_space<vmem>>, vector<1x32xf32>
    %120 = vector.broadcast %119 : vector<1x32xf32> to vector<4x32xf32>
    %121 = arith.addf %118, %120 : vector<4x32xf32>
    %122 = arith.truncf %121 : vector<4x32xf32> to vector<4x32xbf16>
    %c0_88 = arith.constant 0 : index
    %c0_89 = arith.constant 0 : index
    %123 = vector.load %arg6[%c0_88, %c0_89] : memref<32x64xbf16, #tpu.memory_space<vmem>>, vector<32x64xbf16>
    %cst_90 = arith.constant dense<0.000000e+00> : vector<4x64xf32>
    %124 = tpu.matmul %122, %123, %cst_90 {dimension_numbers = #tpu.dot_dimension_numbers<[1], [0], [0], [1], [0, 0, 1, 1], [], []>} : vector<4x32xbf16>, vector<32x64xbf16>, vector<4x64xf32> -> vector<4x64xf32>
    %c0_91 = arith.constant 0 : index
    %c0_92 = arith.constant 0 : index
    %125 = vector.load %arg7[%c0_91, %c0_92] : memref<1x64xf32, #tpu.memory_space<vmem>>, vector<1x64xf32>
    %126 = vector.broadcast %125 : vector<1x64xf32> to vector<4x64xf32>
    %127 = arith.addf %124, %126 : vector<4x64xf32>
    %128 = arith.mulf %127, %127 : vector<4x64xf32>
    %129 = arith.mulf %127, %128 : vector<4x64xf32>
    %cst_93 = arith.constant 4.471500e-02 : f32
    %130 = vector.broadcast %cst_93 : f32 to vector<4x64xf32>
    %131 = arith.mulf %130, %129 : vector<4x64xf32>
    %132 = arith.addf %127, %131 : vector<4x64xf32>
    %cst_94 = arith.constant 0.797884583 : f32
    %133 = vector.broadcast %cst_94 : f32 to vector<4x64xf32>
    %134 = arith.mulf %133, %132 : vector<4x64xf32>
    %135 = math.tanh %134 : vector<4x64xf32>
    %cst_95 = arith.constant 1.000000e+00 : f32
    %136 = vector.broadcast %cst_95 : f32 to vector<4x64xf32>
    %137 = arith.addf %136, %135 : vector<4x64xf32>
    %cst_96 = arith.constant 5.000000e-01 : f32
    %138 = vector.broadcast %cst_96 : f32 to vector<4x64xf32>
    %139 = arith.mulf %138, %137 : vector<4x64xf32>
    %140 = arith.mulf %127, %139 : vector<4x64xf32>
    %141 = arith.truncf %140 : vector<4x64xf32> to vector<4x64xbf16>
    %c0_97 = arith.constant 0 : index
    %c0_98 = arith.constant 0 : index
    %142 = vector.load %arg8[%c0_97, %c0_98] : memref<64x32xbf16, #tpu.memory_space<vmem>>, vector<64x32xbf16>
    %cst_99 = arith.constant dense<0.000000e+00> : vector<4x32xf32>
    %143 = tpu.matmul %141, %142, %cst_99 {dimension_numbers = #tpu.dot_dimension_numbers<[1], [0], [0], [1], [0, 0, 1, 1], [], []>} : vector<4x64xbf16>, vector<64x32xbf16>, vector<4x32xf32> -> vector<4x32xf32>
    %c0_100 = arith.constant 0 : index
    %c0_101 = arith.constant 0 : index
    %144 = vector.load %arg9[%c0_100, %c0_101] : memref<1x32xf32, #tpu.memory_space<vmem>>, vector<1x32xf32>
    %145 = vector.broadcast %144 : vector<1x32xf32> to vector<4x32xf32>
    %146 = arith.addf %143, %145 : vector<4x32xf32>
    %147 = arith.addf %121, %146 : vector<4x32xf32>
    %cst_102 = arith.constant dense<0.000000e+00> : vector<4xf32>
    %148 = vector.multi_reduction <add>, %147, %cst_102 [1] : vector<4x32xf32> to vector<4xf32>
    %149 = vector.shape_cast %148 : vector<4xf32> to vector<4x1xf32>
    %cst_103 = arith.constant 3.200000e+01 : f32
    %150 = vector.broadcast %cst_103 : f32 to vector<4x1xf32>
    %151 = arith.divf %149, %150 : vector<4x1xf32>
    %152 = vector.broadcast %151 : vector<4x1xf32> to vector<4x32xf32>
    %153 = arith.subf %147, %152 : vector<4x32xf32>
    %154 = arith.mulf %153, %153 : vector<4x32xf32>
    %cst_104 = arith.constant dense<0.000000e+00> : vector<4xf32>
    %155 = vector.multi_reduction <add>, %154, %cst_104 [1] : vector<4x32xf32> to vector<4xf32>
    %156 = vector.shape_cast %155 : vector<4xf32> to vector<4x1xf32>
    %cst_105 = arith.constant 3.200000e+01 : f32
    %157 = vector.broadcast %cst_105 : f32 to vector<4x1xf32>
    %158 = arith.divf %156, %157 : vector<4x1xf32>
    %159 = vector.broadcast %151 : vector<4x1xf32> to vector<4x32xf32>
    %160 = arith.subf %147, %159 : vector<4x32xf32>
    %cst_106 = arith.constant 9.99999974E-6 : f32
    %161 = vector.broadcast %cst_106 : f32 to vector<4x1xf32>
    %162 = arith.addf %158, %161 : vector<4x1xf32>
    %163 = math.rsqrt %162 : vector<4x1xf32>
    %164 = vector.broadcast %163 : vector<4x1xf32> to vector<4x32xf32>
    %165 = arith.mulf %160, %164 : vector<4x32xf32>
    %c0_107 = arith.constant 0 : index
    %c0_108 = arith.constant 0 : index
    %166 = vector.load %arg12[%c0_107, %c0_108] : memref<1x32xf32, #tpu.memory_space<vmem>>, vector<1x32xf32>
    %167 = vector.broadcast %166 : vector<1x32xf32> to vector<4x32xf32>
    %168 = arith.mulf %165, %167 : vector<4x32xf32>
    %c0_109 = arith.constant 0 : index
    %c0_110 = arith.constant 0 : index
    %169 = vector.load %arg13[%c0_109, %c0_110] : memref<1x32xf32, #tpu.memory_space<vmem>>, vector<1x32xf32>
    %170 = vector.broadcast %169 : vector<1x32xf32> to vector<4x32xf32>
    %171 = arith.addf %168, %170 : vector<4x32xf32>
    %c0_111 = arith.constant 0 : index
    %c0_112 = arith.constant 0 : index
    %c0_113 = arith.constant 0 : index
    %172 = vector.load %arg14[%c0_111, %c0_112, %c0_113] : memref<1x4x32xf32, #tpu.memory_space<vmem>>, vector<1x4x32xf32>
    %173 = vector.shape_cast %172 : vector<1x4x32xf32> to vector<4x32xf32>
    %174 = vector.shape_cast %171 : vector<4x32xf32> to vector<1x4x32xf32>
    tpu.vector_store %arg14[%c0_111, %c0_112, %c0_113], %174 {strides = array<i32>} : memref<1x4x32xf32, #tpu.memory_space<vmem>>, vector<1x4x32xf32>,
    return
  }
  func.func @transform_0(%arg0: i32) -> (i32, i32, i32) {
    %c0_i32 = arith.constant 0 : i32
    %c0_i32_0 = arith.constant 0 : i32
    %c0_i32_1 = arith.constant 0 : i32
    return %arg0, %c0_i32, %c0_i32_0 : i32, i32, i32
  }
  func.func @transform_1(%arg0: i32) -> (i32, i32) {
    %c0_i32 = arith.constant 0 : i32
    %c0_i32_0 = arith.constant 0 : i32
    %c0_i32_1 = arith.constant 0 : i32
    return %c0_i32, %c0_i32_0 : i32, i32
  }
  func.func @transform_2(%arg0: i32) -> (i32, i32) {
    %c0_i32 = arith.constant 0 : i32
    %c0_i32_0 = arith.constant 0 : i32
    %c0_i32_1 = arith.constant 0 : i32
    return %c0_i32, %c0_i32_0 : i32, i32
  }
  func.func @transform_3(%arg0: i32) -> (i32, i32) {
    %c0_i32 = arith.constant 0 : i32
    %c0_i32_0 = arith.constant 0 : i32
    %c0_i32_1 = arith.constant 0 : i32
    return %c0_i32, %c0_i32_0 : i32, i32
  }
  func.func @transform_4(%arg0: i32) -> (i32, i32) {
    %c0_i32 = arith.constant 0 : i32
    %c0_i32_0 = arith.constant 0 : i32
    %c0_i32_1 = arith.constant 0 : i32
    return %c0_i32, %c0_i32_0 : i32, i32
  }
  func.func @transform_5(%arg0: i32) -> (i32, i32) {
    %c0_i32 = arith.constant 0 : i32
    %c0_i32_0 = arith.constant 0 : i32
    %c0_i32_1 = arith.constant 0 : i32
    return %c0_i32, %c0_i32_0 : i32, i32
  }
  func.func @transform_6(%arg0: i32) -> (i32, i32) {
    %c0_i32 = arith.constant 0 : i32
    %c0_i32_0 = arith.constant 0 : i32
    %c0_i32_1 = arith.constant 0 : i32
    return %c0_i32, %c0_i32_0 : i32, i32
  }
  func.func @transform_7(%arg0: i32) -> (i32, i32) {
    %c0_i32 = arith.constant 0 : i32
    %c0_i32_0 = arith.constant 0 : i32
    %c0_i32_1 = arith.constant 0 : i32
    return %c0_i32, %c0_i32_0 : i32, i32
  }
  func.func @transform_8(%arg0: i32) -> (i32, i32) {
    %c0_i32 = arith.constant 0 : i32
    %c0_i32_0 = arith.constant 0 : i32
    %c0_i32_1 = arith.constant 0 : i32
    return %c0_i32, %c0_i32_0 : i32, i32
  }
  func.func @transform_9(%arg0: i32) -> (i32, i32) {
    %c0_i32 = arith.constant 0 : i32
    %c0_i32_0 = arith.constant 0 : i32
    %c0_i32_1 = arith.constant 0 : i32
    return %c0_i32, %c0_i32_0 : i32, i32
  }
  func.func @transform_10(%arg0: i32) -> (i32, i32) {
    %c0_i32 = arith.constant 0 : i32
    %c0_i32_0 = arith.constant 0 : i32
    %c0_i32_1 = arith.constant 0 : i32
    return %c0_i32, %c0_i32_0 : i32, i32
  }
  func.func @transform_11(%arg0: i32) -> (i32, i32) {
    %c0_i32 = arith.constant 0 : i32
    %c0_i32_0 = arith.constant 0 : i32
    %c0_i32_1 = arith.constant 0 : i32
    return %c0_i32, %c0_i32_0 : i32, i32
  }
  func.func @transform_12(%arg0: i32) -> (i32, i32) {
    %c0_i32 = arith.constant 0 : i32
    %c0_i32_0 = arith.constant 0 : i32
    %c0_i32_1 = arith.constant 0 : i32
    return %c0_i32, %c0_i32_0 : i32, i32
  }
  func.func @transform_13(%arg0: i32) -> (i32, i32, i32) {
    %c0_i32 = arith.constant 0 : i32
    %c0_i32_0 = arith.constant 0 : i32
    %c0_i32_1 = arith.constant 0 : i32
    return %arg0, %c0_i32, %c0_i32_0 : i32, i32, i32
  }
}

</mosaic_0001>

<bundles_post_ra>
// kernel: edge_encoder_forward.3
= control target key start
LH: loop header
LB: loop body
LE: loop exit
PB: predicated region body
PF: predicated region fallthrough
CT: control target
= control target key end

     0   :  { %s1262_s25 = smov 0   ;;  %s1410_s0 = inlined_call_operand.vmem [shape: bf16[2,8,32], index: 0, kind: input, shape index: {}]   ;;  %s1411_s1 = inlined_call_operand.vmem [shape: bf16[32,96], index: 1, kind: input, shape index: {}]   ;;  %s1412_s2 = inlined_call_operand.vmem [shape: f32[1,96], index: 2, kind: input, shape index: {}]   ;;  %s1413_s3 = inlined_call_operand.vmem [shape: bf16[32,32], index: 3, kind: input, shape index: {}]   ;;  %s1414_s4 = inlined_call_operand.vmem [shape: f32[1,32], index: 4, kind: input, shape index: {}]   ;;  %s1415_s5 = inlined_call_operand.vmem [shape: bf16[32,64], index: 5, kind: input, shape index: {}]   ;;  %s1416_s6 = inlined_call_operand.vmem [shape: f32[1,64], index: 6, kind: input, shape index: {}]   ;;  %s1417_s7 = inlined_call_operand.vmem [shape: bf16[64,32], index: 7, kind: input, shape index: {}]   ;;  %s1418_s8 = inlined_call_operand.vmem [shape: f32[1,32], index: 8, kind: input, shape index: {}]   ;;  %s1419_s9 = inlined_call_operand.vmem [shape: f32[1,32], index: 9, kind: input, shape index: {}]   ;;  %s1420_s10 = inlined_call_operand.vmem [shape: f32[1,32], index: 10, kind: input, shape index: {}]   ;;  %s1421_s11 = inlined_call_operand.vmem [shape: f32[1,32], index: 11, kind: input, shape index: {}]   ;;  %s1422_s12 = inlined_call_operand.vmem [shape: f32[1,32], index: 12, kind: input, shape index: {}]   ;;  %s1423_s13 = inlined_call_operand.vmem [shape: f32[2,8,32], index: 13, kind: output, shape index: {}]  }
   0x1 LB: > { %s1043_s26 = sadd.s32 4294967295, %s1175_s25   ;;  %p1047_p0 = scmp.ge.s32.totalorder %s1175_s25, 1  ;;  %s1175_s25 = sphi %s1262_s25, %s23_s25  }
   0x2   : > { %p386_p1 = scmp.lt.s32.totalorder %s1175_s25, 3 }
   0x4   : > { %p387_p2 = pnand %p1047_p0, %p386_p1 }
   0x5   : > { %p428_p3 = scmp.lt.s32.totalorder (!%p387_p2), %s1043_s26, 1  ;;  %s1177_s20 = smov (!%p387_p2), 72  }
   0x6   : > { %390 = sbr.rel (%p387_p2) target bundleno = 1914 (0x77a), region = 72  ;;  %s1178_s21 = smov (!%p387_p2), 120  }
   0x7   : > { %s1179_s22 = smov (!%p387_p2), 88   ;;  %s1180_s23 = smov (!%p387_p2), 104  }
   0x8   : > { %s1181_s24 = smov (!%p387_p2), 112   ;;  %s1182_s27 = smov (!%p387_p2), 80  }
   0x9   : > { %s1183_s28 = smov (!%p387_p2), 96   ;;  %s1184_s29 = smov (!%p387_p2), 56  }
   0xa   : > { %s1185_s30 = smov (!%p387_p2), 48   ;;  %s1187_s15 = smov (!%p387_p2), 40  }
   0xb   : > { %v1105_v0 = vld [vmem:[%s1411_s1 + $0x8] sm:$0xff]  ;;  %v1104_v1 = vld [vmem:[%s1411_s1] sm:$0xff]  ;;  %s1425_s26 = smov (!%p428_p3, %s1043_s26), 1  ;;  %vm459_vm0 = vcmask 261120   ;;  %vm476_vm1 = vcmask 64512   ;;  %vm685_vm2 = vcmask 1043456  }
   0xc   : > { %469 = vmatpush.bf16.msra.mxu0 %v1105_v0  ;;  %s1048_s14 = sshll.u32 %s1425_s26, 2  ;;  %v1137_v3 = vld [vmem:[%s1412_s2] ss:$0 sm:$0xff]  ;;  %s1188_s16 = smov 8   ;;  %vm764_vm3 = vcmask 130112   ;;  %vm770_vm4 = vcmask 195712  }
   0xd   : > { %s431_s17 = scalar_lea.vmem %s1410_s0, %s1048_s14  ;;  %s1186_s14 = smov 64   ;;  %vm776_vm5 = vcmask 261312   ;;  %vm939_vm10 = vcmask 523264  }
   0xe   : > { %v1282_v2 = vld [vmem:[%s431_s17] sm:$0xf]  ;;  %s1189_s17 = smov 16   ;;  %s1190_s18 = smov 24  }
  0x10   : > { %470 = vmatpush.bf16.msra.mxu0 %v1104_v1 }
  0x13   : > { %1058 = vmatmul.msk.bf16.vlgmr.msra.gmra.mxu0 %vm459_vm0, %v1282_v2 }
  0x90   : > { %v472_v4 = vpop.f32.mrf.mxu0 }
  0x91   : > { %v1289_v5 = vadd.f32 %v1137_v3, %v472_v4 }
  0x93   : > { %524 = vrot.lane.b32.xlu2 %v1289_v5, %s1177_s20  ;;  %489 = vrot.lane.b32.xlu1 %v1289_v5, %s1178_s21  ;;  %477 = vst.msk [vmem:[#allocation2] sm:$0xff] %vm476_vm1, %v1289_v5 }
  0x94   : > { %494 = vrot.lane.b32.xlu0 %v1289_v5, %s1179_s22 }
  0x98   : > { %v474_v6 = vpop.f32.mrf.mxu0 }
  0x9a   : > { %v534_v32 = vld [vmem:[#allocation2] sm:$0xff] }
  0x9b   : > { %519 = vrot.lane.b32.xlu2 %v1289_v5, %s1180_s23  ;;  %504 = vrot.lane.b32.xlu1 %v1289_v5, %s1181_s24  ;;  %v538_v33 = vpack.c.bf16 %v534_v32, %v534_v32 }
  0x9c   : > { %509 = vrot.lane.b32.xlu0 %v1289_v5, %s1182_s27 }
  0xa4   : > { %479 = vrot.lane.b32.xlu0 %v1289_v5, %s1183_s28 }
  0xed   : > { %v525_v7 = vpop.permute.xlu2 %524 }
  0xee   : > { %528 = vst.msk [vmem:[#allocation2 + $0x38] sm:$0xff] %vm476_vm1, %v525_v7 }
  0xf5   : > { %v520_v8 = vpop.permute.xlu2 %519  ;;  %v545_v9 = vld [vmem:[#allocation2 + $0x38] sm:$0xff] }
  0xf6   : > { %523 = vst.msk [vmem:[#allocation2 + $0x18] sm:$0xff] %vm476_vm1, %v520_v8  ;;  %v549_v10 = vpack.c.bf16 %v545_v9, %v545_v9 }
  0xf8   : > { %v619_v11 = vsel %vm476_vm1, %v549_v10, 0 }
  0xf9   : > { %628 = vmatpush.bf16.xpose.msrb.mxu0 %v619_v11 }
  0xfd   : > { %v537_v12 = vld [vmem:[#allocation2 + $0x18] sm:$0xff] }
  0xfe   : > { %v541_v13 = vpack.c.bf16 %v537_v12, %v537_v12 }
 0x100   : > { %1062 = vmatmul.msk.bf16.vlgmr.msrb.gmra.mxu0 %vm476_vm1, %v541_v13 }
 0x105   : > { %v490_v14 = vpop.permute.xlu1 %489 }
 0x106   : > { %493 = vst.msk [vmem:[#allocation2 + $0x8] sm:$0xff] %vm476_vm1, %v490_v14  ;;  %v495_v15 = vpop.permute.xlu0 %494 }
 0x107   : > { %498 = vst.msk [vmem:[#allocation2 + $0x28] sm:$0xff] %vm476_vm1, %v495_v15 }
 0x10d   : > { %v505_v16 = vpop.permute.xlu1 %504  ;;  %v535_v21 = vld [vmem:[#allocation2 + $0x8] sm:$0xff] }
 0x10e   : > { %508 = vst.msk [vmem:[#allocation2 + $0x10] sm:$0xff] %vm476_vm1, %v505_v16  ;;  %v510_v17 = vpop.permute.xlu0 %509  ;;  %v543_v18 = vld [vmem:[#allocation2 + $0x28] sm:$0xff]  ;;  %v539_v24 = vpack.c.bf16 %v535_v21, %v535_v21 }
 0x10f   : > { %513 = vst.msk [vmem:[#allocation2 + $0x30] sm:$0xff] %vm476_vm1, %v510_v17  ;;  %v547_v19 = vpack.c.bf16 %v543_v18, %v543_v18 }
 0x111   : > { %v581_v20 = vsel %vm476_vm1, %v547_v19, 0 }
 0x112   : > { %590 = vmatpush.bf16.xpose.msra.mxu2 %v581_v20 }
 0x115   : > { %v536_v27 = vld [vmem:[#allocation2 + $0x10] sm:$0xff] }
 0x116   : > { %v480_v22 = vpop.permute.xlu0 %479  ;;  %v544_v23 = vld [vmem:[#allocation2 + $0x30] sm:$0xff]  ;;  %v540_v29 = vpack.c.bf16 %v536_v27, %v536_v27 }
 0x117   : > { %483 = vst.msk [vmem:[#allocation2 + $0x20] sm:$0xff] %vm476_vm1, %v480_v22  ;;  %v548_v25 = vpack.c.bf16 %v544_v23, %v544_v23 }
 0x119   : > { %1060 = vmatmul.msk.bf16.vlgmr.msra.gmra.mxu2 %vm476_vm1, %v539_v24  ;;  %v600_v26 = vsel %vm476_vm1, %v548_v25, 0 }
 0x11a   : > { %609 = vmatpush.bf16.xpose.msra.mxu3 %v600_v26 }
 0x11e   : > { %v542_v28 = vld [vmem:[#allocation2 + $0x20] sm:$0xff] }
 0x11f   : > { %v546_v30 = vpack.c.bf16 %v542_v28, %v542_v28 }
 0x121   : > { %1061 = vmatmul.msk.bf16.vlgmr.msra.gmra.mxu3 %vm476_vm1, %v540_v29  ;;  %v562_v31 = vsel %vm476_vm1, %v546_v30, 0 }
 0x122   : > { %571 = vmatpush.bf16.xpose.msra.mxu1 %v562_v31 }
 0x129   : > { %1059 = vmatmul.msk.bf16.vlgmr.msra.gmra.mxu1 %vm476_vm1, %v538_v33 }
 0x17d   : > { %v630_v34 = vpop.f32.mrf.mxu0 }
 0x17e   : > { %v643_v35 = vsel %vm476_vm1, %v630_v34, -inf }
 0x17f   : > { %644 = vmax.xlane.f32.xlu0 %v643_v35 }
 0x185   : > { %v632_v36 = vpop.f32.mrf.mxu0 }
 0x19c   : > { %v592_v37 = vpop.f32.mrf.mxu2 }
 0x19d   : > { %v637_v38 = vsel %vm476_vm1, %v592_v37, -inf }
 0x19e   : > { %638 = vmax.xlane.f32.xlu1 %v637_v38 }
 0x1a4   : > { %v594_v39 = vpop.f32.mrf.mxu2  ;;  %v611_v40 = vpop.f32.mrf.mxu3 }
 0x1a5   : > { %v640_v41 = vsel %vm476_vm1, %v611_v40, -inf }
 0x1a6   : > { %641 = vmax.xlane.f32.xlu2 %v640_v41  ;;  %v573_v42 = vpop.f32.mrf.mxu1 }
 0x1a7   : > { %v634_v44 = vsel %vm476_vm1, %v573_v42, -inf }
 0x1ac   : > { %v613_v43 = vpop.f32.mrf.mxu3 }
 0x1ad   : > { %v1107_v43 = vld [vmem:[%s1413_s3 + $0x8] sm:$0xff] }
 0x1ae   : > { %635 = vmax.xlane.f32.xlu2 %v634_v44  ;;  %v575_v45 = vpop.f32.mrf.mxu1  ;;  %v1106_v44 = vld [vmem:[%s1413_s3] sm:$0xff] }
 0x1b7   : > { %499 = vrot.lane.b32.xlu1 %v1289_v5, %s1184_s29 }
 0x1c6   : > { %514 = vrot.lane.b32.xlu2 %v1289_v5, %s1185_s30 }
 0x1ce   : > { %484 = vrot.lane.b32.xlu2 %v1289_v5, %s1186_s14 }
 0x1f2   : > { %v645_v46 = vpop.xlane.xlu0 %644 }
 0x1f3   : > { %v649_v47 = vsub.f32 %v630_v34, %v645_v46 }
 0x1f5   : > { %v656_v48 = vmul.f32 1.442695, %v649_v47 }
 0x1f7   : > { %1145 = vpow2.f32 %v656_v48 }
 0x1fd   : > { %v1322_v49 = vpop.eup %1145 }
 0x1fe   : > { %v667_v50 = vsel %vm476_vm1, %v1322_v49, 0.0 }
 0x1ff   : > { %668 = vadd.xlane.f32.xlu1 %v667_v50  ;;  %v1138_v50 = vld [vmem:[%s1414_s4] ss:$0 sm:$0xff] }
 0x211   : > { %v639_v51 = vpop.xlane.xlu1 %638 }
 0x212   : > { %v647_v52 = vsub.f32 %v592_v37, %v639_v51  ;;  %v438_v51 = vunpack.c.l.bf16 %v1282_v2 }
 0x214   : > { %v652_v53 = vmul.f32 1.442695, %v647_v52 }
 0x216   : > { %1147 = vpow2.f32 %v652_v53 }
 0x219   : > { %v642_v54 = vpop.xlane.xlu2 %641 }
 0x21a   : > { %v648_v55 = vsub.f32 %v611_v40, %v642_v54 }
 0x21c   : > { %v1148_v56 = vpop.eup %1147  ;;  %v654_v57 = vmul.f32 1.442695, %v648_v55 }
 0x21d   : > { %v661_v58 = vsel %vm476_vm1, %v1148_v56, 0.0 }
 0x21e   : > { %1149 = vpow2.f32 %v654_v57  ;;  %662 = vadd.xlane.f32.xlu0 %v661_v58  ;;  %v1191_v57 = vmov 32.0  }
 0x221   : > { %v636_v59 = vpop.xlane.xlu2 %635 }
 0x222   : > { %v646_v60 = vsub.f32 %v573_v42, %v636_v59 }
 0x224   : > { %v1150_v61 = vpop.eup %1149  ;;  %v650_v62 = vmul.f32 1.442695, %v646_v60 }
 0x225   : > { %v664_v63 = vsel %vm476_vm1, %v1150_v61, 0.0 }
 0x226   : > { %1151 = vpow2.f32 %v650_v62  ;;  %665 = vadd.xlane.f32.xlu0 %v664_v63 }
 0x229   : > { %v500_v0 = vpop.permute.xlu1 %499  ;;  %v515_v1 = vpop.permute.xlu2 %514 }
 0x22a   : > { %503 = vst.msk [vmem:[#allocation2 + $0x48] sm:$0xff] %vm476_vm1, %v500_v0 }
 0x22b   : > { %518 = vst.msk [vmem:[#allocation2 + $0x50] sm:$0xff] %vm476_vm1, %v515_v1 }
 0x22c   : > { %v1152_v3 = vpop.eup %1151 }
 0x22d   : > { %v658_v4 = vsel %vm476_vm1, %v1152_v3, 0.0 }
 0x22e   : > { %659 = vadd.xlane.f32.xlu2 %v658_v4 }
 0x231   : > { %v485_v6 = vpop.permute.xlu2 %484  ;;  %v551_v7 = vld [vmem:[#allocation2 + $0x48] sm:$0xff] }
 0x232   : > { %488 = vst.msk [vmem:[#allocation2 + $0x40] sm:$0xff] %vm476_vm1, %v485_v6  ;;  %v555_v8 = vpack.c.bf16 %v551_v7, %v551_v7  ;;  %v552_v9 = vld [vmem:[#allocation2 + $0x50] sm:$0xff]  ;;  %v1109_v6 = vld [vmem:[%s1415_s5 + $0x8] sm:$0xff]  ;;  %v1108_v7 = vld [vmem:[%s1415_s5] sm:$0xff] }
 0x233   : > { %v556_v10 = vpack.c.bf16 %v552_v9, %v552_v9 }
 0x234   : > { %v706_v11 = vsel %vm685_vm2, %v555_v8, 0 }
 0x235   : > { %715 = vmatpush.bf16.msrb.mxu2 %v706_v11  ;;  %v725_v12 = vsel %vm685_vm2, %v556_v10, 0 }
 0x236   : > { %734 = vmatpush.bf16.msrb.mxu3 %v725_v12 }
 0x239   : > { %v550_v13 = vld [vmem:[#allocation2 + $0x40] sm:$0xff]  ;;  %886 = vmatpush.bf16.msra.mxu2 %v1109_v6 }
 0x23a   : > { %529 = vrot.lane.b32.xlu0 %v1289_v5, %s1187_s15  ;;  %v554_v14 = vpack.c.bf16 %v550_v13, %v550_v13 }
 0x23c   : > { %v687_v15 = vsel %vm685_vm2, %v554_v14, 0 }
 0x23d   : > { %696 = vmatpush.bf16.msrb.mxu1 %v687_v15  ;;  %887 = vmatpush.bf16.msra.mxu2 %v1108_v7 }
 0x241   : > { %809 = vmatpush.bf16.msra.mxu1 %v1107_v43 }
 0x245   : > { %810 = vmatpush.bf16.msra.mxu1 %v1106_v44 }
 0x272   : > { %v669_v25 = vpop.xlane.xlu1 %668 }
 0x291   : > { %v663_v16 = vpop.xlane.xlu0 %662 }
 0x292   : > { %1153 = vrcp.f32 %v663_v16 }
 0x298   : > { %v1154_v17 = vpop.eup %1153 }
 0x299   : > { %v675_v18 = vmul.f32 %v1154_v17, %v1148_v56  ;;  %v666_v19 = vpop.xlane.xlu0 %665  ;;  %v1139_v17 = vld [vmem:[%s1419_s9] ss:$0 sm:$0xff] }
 0x29a   : > { %1155 = vrcp.f32 %v666_v19  ;;  %v1140_v19 = vld [vmem:[%s1420_s10] ss:$0 sm:$0xff] }
 0x29b   : > { %v679_v20 = vpack.c.bf16 %v675_v18, %v675_v18 }
 0x29d   : > { %1064 = vmatmul.msk.bf16.vlgmr.msrb.gmra.mxu2 %vm476_vm1, %v679_v20 }
 0x2a0   : > { %v1156_v21 = vpop.eup %1155 }
 0x2a1   : > { %v676_v22 = vmul.f32 %v1156_v21, %v1150_v61  ;;  %v660_v23 = vpop.xlane.xlu2 %659 }
 0x2a2   : > { %1157 = vrcp.f32 %v660_v23 }
 0x2a3   : > { %v680_v24 = vpack.c.bf16 %v676_v22, %v676_v22  ;;  %1159 = vrcp.f32 %v669_v25  ;;  %v1111_v25 = vld [vmem:[%s1417_s7 + $0x8] sm:$0xff] }
 0x2a4   : > { %1161 = vrcp.f32 %v1191_v57 }
 0x2a5   : > { %1065 = vmatmul.msk.bf16.vlgmr.msrb.gmra.mxu3 %vm476_vm1, %v680_v24  ;;  %v1113_v24 = vld [vmem:[%s1417_s7 + $0x18] sm:$0xff] }
 0x2a6   : > { %947 = vmatpush.bf16.msra.mxu3 %v1113_v24 }
 0x2a8   : > { %v1158_v5 = vpop.eup %1157 }
 0x2a9   : > { %v674_v26 = vmul.f32 %v1158_v5, %v1152_v3  ;;  %v1160_v29 = vpop.eup %1159  ;;  %v1112_v5 = vld [vmem:[%s1417_s7 + $0x10] sm:$0xff] }
 0x2aa   : > { %v677_v31 = vmul.f32 %v1160_v29, %v1322_v49  ;;  %v1162_v58 = vpop.eup %1161  ;;  %948 = vmatpush.bf16.msra.mxu3 %v1112_v5 }
 0x2ab   : > { %v678_v27 = vpack.c.bf16 %v674_v26, %v674_v26  ;;  %v821_v59 = vmul.f32 32.0, %v1162_v58  ;;  %vm825_vm6 = vweird.f32 %v1162_v58  ;;  %v1110_v26 = vld [vmem:[%s1417_s7] sm:$0xff] }
 0x2ac   : > { %v530_v28 = vpop.permute.xlu0 %529  ;;  %v681_v34 = vpack.c.bf16 %v677_v31, %v677_v31 }
 0x2ad   : > { %533 = vst.msk [vmem:[#allocation2 + $0x58] sm:$0xff] %vm476_vm1, %v530_v28  ;;  %1063 = vmatmul.msk.bf16.vlgmr.msrb.gmra.mxu1 %vm476_vm1, %v678_v27  ;;  %v822_v60 = vsub.f32 1.0, %v821_v59  ;;  %v1141_v27 = vld [vmem:[%s1416_s6] ss:$0 sm:$0xff] }
 0x2ae   : > { %949 = vmatpush.bf16.msra.mxu3 %v1111_v25 }
 0x2af   : > { %v823_v61 = vmul.f32 %v1162_v58, %v822_v60 }
 0x2b1   : > { %v824_v62 = vadd.f32 %v1162_v58, %v823_v61  ;;  %v1143_v61 = vld [vmem:[%s1421_s11] ss:$0 sm:$0xff] }
 0x2b2   : > { %950 = vmatpush.bf16.msra.mxu3 %v1110_v26 }
 0x2b3   : > { %v1356_v63 = vsel %vm825_vm6, %v1162_v58, %v824_v62 }
 0x2b4   : > { %v553_v30 = vld [vmem:[#allocation2 + $0x58] sm:$0xff] }
 0x2b5   : > { %v557_v32 = vpack.c.bf16 %v553_v30, %v553_v30 }
 0x2b7   : > { %v744_v33 = vsel %vm685_vm2, %v557_v32, 0 }
 0x2b8   : > { %753 = vmatpush.bf16.msra.mxu0 %v744_v33 }
 0x2bb   : > { %1066 = vmatmul.msk.bf16.vlgmr.msra.gmra.mxu0 %vm476_vm1, %v681_v34 }
 0x320   : > { %v717_v35 = vpop.f32.mrf.mxu2 }
 0x321   : > { %761 = vrot.lane.b32.xlu0 %v717_v35, %s1188_s16 }
 0x328   : > { %v719_v36 = vpop.f32.mrf.mxu2  ;;  %v736_v37 = vpop.f32.mrf.mxu3 }
 0x329   : > { %767 = vrot.lane.b32.xlu0 %v736_v37, %s1189_s17  ;;  %s1049_s17 = sshll.u32 %s1425_s26, 3 }
 0x32a   : > { %v698_v38 = vpop.f32.mrf.mxu1  ;;  %s435_s22 = scalar_lea.vmem %s1423_s13, %s1049_s17 }
 0x32b   : > { %759 = vst.msk [vmem:[#allocation3] sm:$0xff] %vm476_vm1, %v698_v38 }
 0x330   : > { %v738_v39 = vpop.f32.mrf.mxu3 }
 0x332   : > { %v700_v40 = vpop.f32.mrf.mxu1 }
 0x338   : > { %v755_v41 = vpop.f32.mrf.mxu0 }
 0x339   : > { %773 = vrot.lane.b32.xlu0 %v755_v41, %s1190_s18  ;;  %v1142_v41 = vld [vmem:[%s1418_s8] ss:$0 sm:$0xff] }
 0x340   : > { %v757_v42 = vpop.f32.mrf.mxu0 }
 0x393   : > { %v762_v45 = vpop.permute.xlu0 %761 }
 0x394   : > { %765 = vst.msk [vmem:[#allocation3] sm:$0xff] %vm764_vm3, %v762_v45 }
 0x39b   : > { %v768_v46 = vpop.permute.xlu0 %767 }
 0x39c   : > { %771 = vst.msk [vmem:[#allocation3] sm:$0xff] %vm770_vm4, %v768_v46 }
 0x3ab   : > { %v774_v47 = vpop.permute.xlu0 %773 }
 0x3ac   : > { %777 = vst.msk [vmem:[#allocation3] sm:$0xff] %vm776_vm5, %v774_v47 }
 0x3b3   : > { %v778_v48 = vld [vmem:[#allocation3] sm:$0xff] }
 0x3b4   : > { %v779_v49 = vpack.c.bf16 %v778_v48, %v778_v48 }
 0x3b6   : > { %1075 = vmatmul.msk.bf16.vlgmr.msra.gmra.mxu1 %vm459_vm0, %v779_v49 }
 0x433   : > { %v812_v52 = vpop.f32.mrf.mxu1 }
 0x434   : > { %v813_v53 = vadd.f32 %v1138_v50, %v812_v52 }
 0x436   : > { %v816_v54 = vadd.f32 %v813_v53, %v438_v51 }
 0x438   : > { %v817_v55 = vsel %vm459_vm0, %v816_v54, 0.0 }
 0x439   : > { %818 = vadd.xlane.f32.xlu1 %v817_v55 }
 0x43b   : > { %v814_v56 = vpop.f32.mrf.mxu1 }
 0x4ac   : > { %v819_v0 = vpop.xlane.xlu1 %818 }
 0x4ad   : > { %v827_v2 = vmul.f32 %v1356_v63, %v819_v0 }
 0x4af   : > { %v828_v1 = vsub.f32 %v816_v54, %v827_v2 }
 0x4b1   : > { %v829_v3 = vmul.f32 %v828_v1, %v828_v1 }
 0x4b3   : > { %v830_v4 = vsel %vm459_vm0, %v829_v3, 0.0 }
 0x4b4   : > { %831 = vadd.xlane.f32.xlu0 %v830_v4 }
 0x527   : > { %v832_v8 = vpop.xlane.xlu0 %831 }
 0x528   : > { %v833_v9 = vmul.f32 %v832_v8, %v1356_v63 }
 0x52a   : > { %v834_v10 = vadd.f32 1e-05, %v833_v9 }
 0x52c   : > { %1163 = vrsqrt.f32 %v834_v10  ;;  %vm841_vm8 = vweird.f32 %v834_v10 }
 0x532   : > { %v1164_v11 = vpop.eup %1163 }
 0x533   : > { %v836_v12 = vmul.f32 %v1164_v11, %v834_v10  ;;  %vm842_vm7 = vweird.f32 %v1164_v11 }
 0x534   : > { %vm843_vm9 = vmor %vm841_vm8, %vm842_vm7 }
 0x535   : > { %v837_v13 = vmul.f32 %v1164_v11, %v836_v12 }
 0x537   : > { %v838_v14 = vmul.f32 0.5, %v837_v13 }
 0x539   : > { %v839_v15 = vsub.f32 1.5, %v838_v14 }
 0x53b   : > { %v840_v16 = vmul.f32 %v1164_v11, %v839_v15 }
 0x53d   : > { %v844_v18 = vsel %vm843_vm9, %v1164_v11, %v840_v16 }
 0x53e   : > { %v845_v20 = vmul.f32 %v844_v18, %v828_v1 }
 0x540   : > { %v850_v21 = vmul.f32 %v1139_v17, %v845_v20 }
 0x542   : > { %v855_v22 = vadd.f32 %v1140_v19, %v850_v21 }
 0x544   : > { %v856_v23 = vpack.c.bf16 %v855_v22, %v855_v22 }
 0x546   : > { %1084 = vmatmul.msk.bf16.vlgmr.msra.gmra.mxu2 %vm459_vm0, %v856_v23 }
 0x5c9   : > { %v889_v28 = vpop.f32.mrf.mxu2 }
 0x5ca   : > { %v890_v29 = vadd.f32 %v1141_v27, %v889_v28 }
 0x5cc   : > { %v893_v30 = vmul.f32 %v890_v29, %v890_v29 }
 0x5ce   : > { %v894_v31 = vmul.f32 %v893_v30, %v890_v29 }
 0x5d0   : > { %v895_v32 = vmul.f32 0.044715, %v894_v31 }
 0x5d1   : > { %v891_v33 = vpop.f32.mrf.mxu2 }
 0x5d2   : > { %v896_v34 = vadd.f32 %v895_v32, %v890_v29 }
 0x5d4   : > { %v897_v35 = vmul.f32 0.7978846, %v896_v34 }
 0x5d6   : > { %1165 = vtanh.f32 %v897_v35 }
 0x5dc   : > { %v1166_v36 = vpop.eup %1165 }
 0x5dd   : > { %v899_v37 = vadd.f32 1.0, %v1166_v36 }
 0x5df   : > { %v900_v38 = vmul.f32 0.5, %v899_v37 }
 0x5e1   : > { %v901_v39 = vmul.f32 %v900_v38, %v890_v29 }
 0x5e3   : > { %v902_v40 = vpack.c.bf16 %v901_v39, %v901_v39 }
 0x5e5   : > { %1101 = vmatmul.msk.bf16.vlgmr.msra.gmra.mxu3 %vm939_vm10, %v902_v40 }
 0x668   : > { %v952_v42 = vpop.f32.mrf.mxu3 }
 0x669   : > { %v953_v43 = vadd.f32 %v1142_v41, %v952_v42 }
 0x66b   : > { %v956_v44 = vadd.f32 %v953_v43, %v855_v22 }
 0x66d   : > { %v957_v45 = vsel %vm459_vm0, %v956_v44, 0.0 }
 0x66e   : > { %958 = vadd.xlane.f32.xlu1 %v957_v45 }
 0x670   : > { %v954_v46 = vpop.f32.mrf.mxu3 }
 0x6e1   : > { %v959_v47 = vpop.xlane.xlu1 %958 }
 0x6e2   : > { %v960_v48 = vmul.f32 %v959_v47, %v1356_v63 }
 0x6e4   : > { %v961_v49 = vsub.f32 %v956_v44, %v960_v48 }
 0x6e6   : > { %v962_v50 = vmul.f32 %v961_v49, %v961_v49 }
 0x6e8   : > { %v963_v51 = vsel %vm459_vm0, %v962_v50, 0.0 }
 0x6e9   : > { %964 = vadd.xlane.f32.xlu2 %v963_v51 }
 0x75c   : > { %v965_v52 = vpop.xlane.xlu2 %964 }
 0x75d   : > { %v966_v53 = vmul.f32 %v965_v52, %v1356_v63  ;;  %v1144_v63 = vld [vmem:[%s1422_s12] ss:$0 sm:$0xff] }
 0x75f   : > { %v967_v54 = vadd.f32 1e-05, %v966_v53 }
 0x761   : > { %1167 = vrsqrt.f32 %v967_v54  ;;  %vm974_vm12 = vweird.f32 %v967_v54 }
 0x767   : > { %v1168_v55 = vpop.eup %1167 }
 0x768   : > { %v969_v56 = vmul.f32 %v1168_v55, %v967_v54  ;;  %vm975_vm11 = vweird.f32 %v1168_v55 }
 0x769   : > { %vm976_vm13 = vmor %vm974_vm12, %vm975_vm11 }
 0x76a   : > { %v970_v57 = vmul.f32 %v1168_v55, %v969_v56 }
 0x76c   : > { %v971_v58 = vmul.f32 0.5, %v970_v57 }
 0x76e   : > { %v972_v59 = vsub.f32 1.5, %v971_v58 }
 0x770   : > { %v973_v60 = vmul.f32 %v1168_v55, %v972_v59 }
 0x772   : > { %v977_v62 = vsel %vm976_vm13, %v1168_v55, %v973_v60 }
 0x773   : > { %v978_v0 = vmul.f32 %v977_v62, %v961_v49 }
 0x775   : > { %v983_v2 = vmul.f32 %v1143_v61, %v978_v0 }
 0x777   : > { %v988_v1 = vadd.f32 %v1144_v63, %v983_v2 }
 0x779   : > { %989 = vst.msk [vmem:[%s435_s22] sm:$0xff] %vm459_vm0, %v988_v1 }
 0x77a PF: > { %s23_s25 = sadd.s32 1, %s1175_s25  }
 0x77b   : > { %p20_p4 = scmp.ge.s32.totalorder %s23_s25, 4  }
 0x77d   :  { %22 = sbr.rel (!%p20_p4) target bundleno = 1 (0x1), region = 113 }

// kernel: edge_encoder_forward.4
= control target key start
LH: loop header
LB: loop body
LE: loop exit
PB: predicated region body
PF: predicated region fallthrough
CT: control target
= control target key end

     0   :  { %s1266_s25 = smov 0   ;;  %s1414_s0 = inlined_call_operand.vmem [shape: bf16[2,4,32], index: 0, kind: input, shape index: {}]   ;;  %s1415_s1 = inlined_call_operand.vmem [shape: bf16[32,96], index: 1, kind: input, shape index: {}]   ;;  %s1416_s2 = inlined_call_operand.vmem [shape: f32[1,96], index: 2, kind: input, shape index: {}]   ;;  %s1417_s3 = inlined_call_operand.vmem [shape: bf16[32,32], index: 3, kind: input, shape index: {}]   ;;  %s1418_s4 = inlined_call_operand.vmem [shape: f32[1,32], index: 4, kind: input, shape index: {}]   ;;  %s1419_s5 = inlined_call_operand.vmem [shape: bf16[32,64], index: 5, kind: input, shape index: {}]   ;;  %s1420_s6 = inlined_call_operand.vmem [shape: f32[1,64], index: 6, kind: input, shape index: {}]   ;;  %s1421_s7 = inlined_call_operand.vmem [shape: bf16[64,32], index: 7, kind: input, shape index: {}]   ;;  %s1422_s8 = inlined_call_operand.vmem [shape: f32[1,32], index: 8, kind: input, shape index: {}]   ;;  %s1423_s9 = inlined_call_operand.vmem [shape: f32[1,32], index: 9, kind: input, shape index: {}]   ;;  %s1424_s10 = inlined_call_operand.vmem [shape: f32[1,32], index: 10, kind: input, shape index: {}]   ;;  %s1425_s11 = inlined_call_operand.vmem [shape: f32[1,32], index: 11, kind: input, shape index: {}]   ;;  %s1426_s12 = inlined_call_operand.vmem [shape: f32[1,32], index: 12, kind: input, shape index: {}]   ;;  %s1427_s13 = inlined_call_operand.vmem [shape: f32[2,4,32], index: 13, kind: output, shape index: {}]  }
   0x1 LB: > { %s1047_s26 = sadd.s32 4294967295, %s1179_s25   ;;  %p1051_p0 = scmp.ge.s32.totalorder %s1179_s25, 1  ;;  %s1179_s25 = sphi %s1266_s25, %s23_s25  }
   0x2   : > { %p386_p1 = scmp.lt.s32.totalorder %s1179_s25, 3 }
   0x4   : > { %p387_p2 = pnand %p1051_p0, %p386_p1 }
   0x5   : > { %p428_p3 = scmp.lt.s32.totalorder (!%p387_p2), %s1047_s26, 1  ;;  %s1181_s20 = smov (!%p387_p2), 72  }
   0x6   : > { %390 = sbr.rel (%p387_p2) target bundleno = 1914 (0x77a), region = 72  ;;  %s1182_s21 = smov (!%p387_p2), 120  }
   0x7   : > { %s1183_s22 = smov (!%p387_p2), 88   ;;  %s1184_s23 = smov (!%p387_p2), 104  }
   0x8   : > { %s1185_s24 = smov (!%p387_p2), 112   ;;  %s1186_s27 = smov (!%p387_p2), 80  }
   0x9   : > { %s1187_s28 = smov (!%p387_p2), 96   ;;  %s1188_s29 = smov (!%p387_p2), 56  }
   0xa   : > { %s1189_s30 = smov (!%p387_p2), 48   ;;  %s1191_s15 = smov (!%p387_p2), 40  }
   0xb   : > { %v1109_v0 = vld [vmem:[%s1415_s1 + $0x8] sm:$0xff]  ;;  %v1108_v1 = vld [vmem:[%s1415_s1] sm:$0xff]  ;;  %s1429_s26 = smov (!%p428_p3, %s1047_s26), 1  ;;  %vm459_vm0 = vcmask 261120   ;;  %vm476_vm1 = vcmask 60416   ;;  %vm558_vm2 = vcmask 64512  }
   0xc   : > { %469 = vmatpush.bf16.msra.mxu0 %v1109_v0  ;;  %s1052_s14 = sshll.u32 %s1429_s26, 1  ;;  %v1141_v3 = vld [vmem:[%s1416_s2] ss:$0 sm:$0xff]  ;;  %vm635_vm3 = vcmask 27648   ;;  %vm688_vm4 = vcmask 1041408   ;;  %vm684_vm5 = vcmask 31744  }
   0xd   : > { %s431_s17 = scalar_lea.vmem %s1414_s0, %s1052_s14  ;;  %s1190_s14 = smov 64   ;;  %vm767_vm6 = vcmask 126016   ;;  %vm773_vm7 = vcmask 191616   ;;  %vm779_vm8 = vcmask 257216   ;;  %vm820_vm9 = vcmask 257024  }
   0xe   : > { %v1286_v2 = vld [vmem:[%s431_s17] sm:$0x3]  ;;  %s1192_s16 = smov 8   ;;  %s1193_s17 = smov 16   ;;  %vm943_vm14 = vcmask 523264  }
   0xf   : > { %s1194_s18 = smov 24  }
  0x10   : > { %470 = vmatpush.bf16.msra.mxu0 %v1108_v1 }
  0x13   : > { %1062 = vmatmul.msk.bf16.vlgmr.msra.gmra.mxu0 %vm459_vm0, %v1286_v2 }
  0x90   : > { %v472_v4 = vpop.f32.mrf.mxu0 }
  0x91   : > { %v1293_v5 = vadd.f32 %v1141_v3, %v472_v4 }
  0x93   : > { %524 = vrot.lane.b32.xlu2 %v1293_v5, %s1181_s20  ;;  %489 = vrot.lane.b32.xlu1 %v1293_v5, %s1182_s21  ;;  %477 = vst.msk [vmem:[#allocation2] sm:$0xf] %vm476_vm1, %v1293_v5 }
  0x94   : > { %494 = vrot.lane.b32.xlu0 %v1293_v5, %s1183_s22 }
  0x98   : > { %v474_v6 = vpop.f32.mrf.mxu0 }
  0x9a   : > { %v534_v32 = vld [vmem:[#allocation2] sm:$0xf] }
  0x9b   : > { %519 = vrot.lane.b32.xlu2 %v1293_v5, %s1184_s23  ;;  %504 = vrot.lane.b32.xlu1 %v1293_v5, %s1185_s24  ;;  %v538_v33 = vpack.c.bf16 %v534_v32, %v534_v32 }
  0x9c   : > { %509 = vrot.lane.b32.xlu0 %v1293_v5, %s1186_s27 }
  0xa4   : > { %479 = vrot.lane.b32.xlu0 %v1293_v5, %s1187_s28 }
  0xed   : > { %v525_v7 = vpop.permute.xlu2 %524 }
  0xee   : > { %528 = vst.msk [vmem:[#allocation2 + $0x1c] sm:$0xf] %vm476_vm1, %v525_v7 }
  0xf5   : > { %v520_v8 = vpop.permute.xlu2 %519  ;;  %v545_v9 = vld [vmem:[#allocation2 + $0x1c] sm:$0xf] }
  0xf6   : > { %523 = vst.msk [vmem:[#allocation2 + $0xc] sm:$0xf] %vm476_vm1, %v520_v8  ;;  %v549_v10 = vpack.c.bf16 %v545_v9, %v545_v9 }
  0xf8   : > { %v620_v11 = vsel %vm558_vm2, %v549_v10, 0 }
  0xf9   : > { %629 = vmatpush.bf16.xpose.msrb.mxu0 %v620_v11 }
  0xfd   : > { %v537_v12 = vld [vmem:[#allocation2 + $0xc] sm:$0xf] }
  0xfe   : > { %v541_v13 = vpack.c.bf16 %v537_v12, %v537_v12 }
 0x100   : > { %1066 = vmatmul.msk.bf16.vlgmr.msrb.gmra.mxu0 %vm558_vm2, %v541_v13 }
 0x105   : > { %v490_v14 = vpop.permute.xlu1 %489 }
 0x106   : > { %493 = vst.msk [vmem:[#allocation2 + $0x4] sm:$0xf] %vm476_vm1, %v490_v14  ;;  %v495_v15 = vpop.permute.xlu0 %494 }
 0x107   : > { %498 = vst.msk [vmem:[#allocation2 + $0x14] sm:$0xf] %vm476_vm1, %v495_v15 }
 0x10d   : > { %v505_v16 = vpop.permute.xlu1 %504  ;;  %v535_v21 = vld [vmem:[#allocation2 + $0x4] sm:$0xf] }
 0x10e   : > { %508 = vst.msk [vmem:[#allocation2 + $0x8] sm:$0xf] %vm476_vm1, %v505_v16  ;;  %v510_v17 = vpop.permute.xlu0 %509  ;;  %v543_v18 = vld [vmem:[#allocation2 + $0x14] sm:$0xf]  ;;  %v539_v24 = vpack.c.bf16 %v535_v21, %v535_v21 }
 0x10f   : > { %513 = vst.msk [vmem:[#allocation2 + $0x18] sm:$0xf] %vm476_vm1, %v510_v17  ;;  %v547_v19 = vpack.c.bf16 %v543_v18, %v543_v18 }
 0x111   : > { %v582_v20 = vsel %vm558_vm2, %v547_v19, 0 }
 0x112   : > { %591 = vmatpush.bf16.xpose.msra.mxu2 %v582_v20 }
 0x115   : > { %v536_v27 = vld [vmem:[#allocation2 + $0x8] sm:$0xf] }
 0x116   : > { %v480_v22 = vpop.permute.xlu0 %479  ;;  %v544_v23 = vld [vmem:[#allocation2 + $0x18] sm:$0xf]  ;;  %v540_v29 = vpack.c.bf16 %v536_v27, %v536_v27 }
 0x117   : > { %483 = vst.msk [vmem:[#allocation2 + $0x10] sm:$0xf] %vm476_vm1, %v480_v22  ;;  %v548_v25 = vpack.c.bf16 %v544_v23, %v544_v23 }
 0x119   : > { %1064 = vmatmul.msk.bf16.vlgmr.msra.gmra.mxu2 %vm558_vm2, %v539_v24  ;;  %v601_v26 = vsel %vm558_vm2, %v548_v25, 0 }
 0x11a   : > { %610 = vmatpush.bf16.xpose.msra.mxu3 %v601_v26 }
 0x11e   : > { %v542_v28 = vld [vmem:[#allocation2 + $0x10] sm:$0xf] }
 0x11f   : > { %v546_v30 = vpack.c.bf16 %v542_v28, %v542_v28 }
 0x121   : > { %1065 = vmatmul.msk.bf16.vlgmr.msra.gmra.mxu3 %vm558_vm2, %v540_v29  ;;  %v563_v31 = vsel %vm558_vm2, %v546_v30, 0 }
 0x122   : > { %572 = vmatpush.bf16.xpose.msra.mxu1 %v563_v31 }
 0x129   : > { %1063 = vmatmul.msk.bf16.vlgmr.msra.gmra.mxu1 %vm558_vm2, %v538_v33 }
 0x17d   : > { %v631_v34 = vpop.f32.mrf.mxu0 }
 0x17e   : > { %v645_v35 = vsel %vm635_vm3, %v631_v34, -inf }
 0x17f   : > { %646 = vmax.xlane.f32.xlu0 %v645_v35 }
 0x185   : > { %v633_v36 = vpop.f32.mrf.mxu0 }
 0x19c   : > { %v593_v37 = vpop.f32.mrf.mxu2 }
 0x19d   : > { %v639_v38 = vsel %vm635_vm3, %v593_v37, -inf }
 0x19e   : > { %640 = vmax.xlane.f32.xlu1 %v639_v38 }
 0x1a4   : > { %v595_v39 = vpop.f32.mrf.mxu2  ;;  %v612_v40 = vpop.f32.mrf.mxu3 }
 0x1a5   : > { %v642_v41 = vsel %vm635_vm3, %v612_v40, -inf }
 0x1a6   : > { %643 = vmax.xlane.f32.xlu2 %v642_v41  ;;  %v574_v42 = vpop.f32.mrf.mxu1 }
 0x1a7   : > { %v636_v44 = vsel %vm635_vm3, %v574_v42, -inf }
 0x1ac   : > { %v614_v43 = vpop.f32.mrf.mxu3 }
 0x1ad   : > { %v1111_v43 = vld [vmem:[%s1417_s3 + $0x8] sm:$0xff] }
 0x1ae   : > { %637 = vmax.xlane.f32.xlu2 %v636_v44  ;;  %v576_v45 = vpop.f32.mrf.mxu1  ;;  %v1110_v44 = vld [vmem:[%s1417_s3] sm:$0xff] }
 0x1b7   : > { %499 = vrot.lane.b32.xlu1 %v1293_v5, %s1188_s29 }
 0x1c6   : > { %514 = vrot.lane.b32.xlu2 %v1293_v5, %s1189_s30 }
 0x1ce   : > { %484 = vrot.lane.b32.xlu2 %v1293_v5, %s1190_s14 }
 0x1f2   : > { %v647_v46 = vpop.xlane.xlu0 %646 }
 0x1f3   : > { %v651_v47 = vsub.f32 %v631_v34, %v647_v46 }
 0x1f5   : > { %v658_v48 = vmul.f32 1.442695, %v651_v47 }
 0x1f7   : > { %1149 = vpow2.f32 %v658_v48 }
 0x1fd   : > { %v1326_v49 = vpop.eup %1149 }
 0x1fe   : > { %v669_v50 = vsel %vm635_vm3, %v1326_v49, 0.0 }
 0x1ff   : > { %670 = vadd.xlane.f32.xlu1 %v669_v50  ;;  %v1142_v50 = vld [vmem:[%s1418_s4] ss:$0 sm:$0xff] }
 0x211   : > { %v641_v51 = vpop.xlane.xlu1 %640 }
 0x212   : > { %v649_v52 = vsub.f32 %v593_v37, %v641_v51  ;;  %v438_v51 = vunpack.c.l.bf16 %v1286_v2 }
 0x214   : > { %v654_v53 = vmul.f32 1.442695, %v649_v52 }
 0x216   : > { %1151 = vpow2.f32 %v654_v53 }
 0x219   : > { %v644_v54 = vpop.xlane.xlu2 %643 }
 0x21a   : > { %v650_v55 = vsub.f32 %v612_v40, %v644_v54 }
 0x21c   : > { %v1152_v56 = vpop.eup %1151  ;;  %v656_v57 = vmul.f32 1.442695, %v650_v55 }
 0x21d   : > { %v663_v58 = vsel %vm635_vm3, %v1152_v56, 0.0 }
 0x21e   : > { %1153 = vpow2.f32 %v656_v57  ;;  %664 = vadd.xlane.f32.xlu0 %v663_v58  ;;  %v1195_v57 = vmov 32.0  }
 0x221   : > { %v638_v59 = vpop.xlane.xlu2 %637 }
 0x222   : > { %v648_v60 = vsub.f32 %v574_v42, %v638_v59 }
 0x224   : > { %v1154_v61 = vpop.eup %1153  ;;  %v652_v62 = vmul.f32 1.442695, %v648_v60 }
 0x225   : > { %v666_v63 = vsel %vm635_vm3, %v1154_v61, 0.0 }
 0x226   : > { %1155 = vpow2.f32 %v652_v62  ;;  %667 = vadd.xlane.f32.xlu0 %v666_v63 }
 0x229   : > { %v500_v0 = vpop.permute.xlu1 %499  ;;  %v515_v1 = vpop.permute.xlu2 %514 }
 0x22a   : > { %503 = vst.msk [vmem:[#allocation2 + $0x24] sm:$0xf] %vm476_vm1, %v500_v0 }
 0x22b   : > { %518 = vst.msk [vmem:[#allocation2 + $0x28] sm:$0xf] %vm476_vm1, %v515_v1 }
 0x22c   : > { %v1156_v3 = vpop.eup %1155 }
 0x22d   : > { %v660_v4 = vsel %vm635_vm3, %v1156_v3, 0.0 }
 0x22e   : > { %661 = vadd.xlane.f32.xlu2 %v660_v4 }
 0x231   : > { %v485_v6 = vpop.permute.xlu2 %484  ;;  %v551_v7 = vld [vmem:[#allocation2 + $0x24] sm:$0xf] }
 0x232   : > { %488 = vst.msk [vmem:[#allocation2 + $0x20] sm:$0xf] %vm476_vm1, %v485_v6  ;;  %v555_v8 = vpack.c.bf16 %v551_v7, %v551_v7  ;;  %v552_v9 = vld [vmem:[#allocation2 + $0x28] sm:$0xf]  ;;  %v1112_v7 = vld [vmem:[%s1419_s5] sm:$0xff] }
 0x233   : > { %v556_v10 = vpack.c.bf16 %v552_v9, %v552_v9  ;;  %v1113_v6 = vld [vmem:[%s1419_s5 + $0x8] sm:$0xff] }
 0x234   : > { %v709_v11 = vsel %vm688_vm4, %v555_v8, 0 }
 0x235   : > { %718 = vmatpush.bf16.msrb.mxu2 %v709_v11  ;;  %v728_v12 = vsel %vm688_vm4, %v556_v10, 0 }
 0x236   : > { %737 = vmatpush.bf16.msrb.mxu3 %v728_v12 }
 0x239   : > { %v550_v13 = vld [vmem:[#allocation2 + $0x20] sm:$0xf]  ;;  %890 = vmatpush.bf16.msra.mxu2 %v1113_v6 }
 0x23a   : > { %529 = vrot.lane.b32.xlu0 %v1293_v5, %s1191_s15  ;;  %v554_v14 = vpack.c.bf16 %v550_v13, %v550_v13 }
 0x23c   : > { %v690_v15 = vsel %vm688_vm4, %v554_v14, 0 }
 0x23d   : > { %699 = vmatpush.bf16.msrb.mxu1 %v690_v15  ;;  %891 = vmatpush.bf16.msra.mxu2 %v1112_v7 }
 0x241   : > { %812 = vmatpush.bf16.msra.mxu1 %v1111_v43 }
 0x245   : > { %813 = vmatpush.bf16.msra.mxu1 %v1110_v44 }
 0x272   : > { %v671_v25 = vpop.xlane.xlu1 %670 }
 0x291   : > { %v665_v16 = vpop.xlane.xlu0 %664 }
 0x292   : > { %1157 = vrcp.f32 %v665_v16 }
 0x298   : > { %v1158_v17 = vpop.eup %1157 }
 0x299   : > { %v677_v18 = vmul.f32 %v1158_v17, %v1152_v56  ;;  %v668_v19 = vpop.xlane.xlu0 %667  ;;  %v1143_v17 = vld [vmem:[%s1423_s9] ss:$0 sm:$0xff] }
 0x29a   : > { %1159 = vrcp.f32 %v668_v19  ;;  %v1144_v19 = vld [vmem:[%s1424_s10] ss:$0 sm:$0xff] }
 0x29b   : > { %v681_v20 = vpack.c.bf16 %v677_v18, %v677_v18 }
 0x29d   : > { %1068 = vmatmul.msk.bf16.vlgmr.msrb.gmra.mxu2 %vm684_vm5, %v681_v20 }
 0x2a0   : > { %v1160_v21 = vpop.eup %1159 }
 0x2a1   : > { %v678_v22 = vmul.f32 %v1160_v21, %v1154_v61  ;;  %v662_v23 = vpop.xlane.xlu2 %661 }
 0x2a2   : > { %1161 = vrcp.f32 %v662_v23 }
 0x2a3   : > { %v682_v24 = vpack.c.bf16 %v678_v22, %v678_v22  ;;  %1163 = vrcp.f32 %v671_v25  ;;  %v1115_v25 = vld [vmem:[%s1421_s7 + $0x8] sm:$0xff] }
 0x2a4   : > { %1165 = vrcp.f32 %v1195_v57 }
 0x2a5   : > { %1069 = vmatmul.msk.bf16.vlgmr.msrb.gmra.mxu3 %vm684_vm5, %v682_v24  ;;  %v1117_v24 = vld [vmem:[%s1421_s7 + $0x18] sm:$0xff] }
 0x2a6   : > { %951 = vmatpush.bf16.msra.mxu3 %v1117_v24 }
 0x2a8   : > { %v1162_v5 = vpop.eup %1161 }
 0x2a9   : > { %v676_v26 = vmul.f32 %v1162_v5, %v1156_v3  ;;  %v1164_v29 = vpop.eup %1163  ;;  %v1116_v5 = vld [vmem:[%s1421_s7 + $0x10] sm:$0xff] }
 0x2aa   : > { %v679_v31 = vmul.f32 %v1164_v29, %v1326_v49  ;;  %v1166_v58 = vpop.eup %1165  ;;  %952 = vmatpush.bf16.msra.mxu3 %v1116_v5 }
 0x2ab   : > { %v680_v27 = vpack.c.bf16 %v676_v26, %v676_v26  ;;  %v825_v59 = vmul.f32 32.0, %v1166_v58  ;;  %vm829_vm10 = vweird.f32 %v1166_v58  ;;  %v1114_v26 = vld [vmem:[%s1421_s7] sm:$0xff] }
 0x2ac   : > { %v530_v28 = vpop.permute.xlu0 %529  ;;  %v683_v34 = vpack.c.bf16 %v679_v31, %v679_v31 }
 0x2ad   : > { %533 = vst.msk [vmem:[#allocation2 + $0x2c] sm:$0xf] %vm476_vm1, %v530_v28  ;;  %1067 = vmatmul.msk.bf16.vlgmr.msrb.gmra.mxu1 %vm684_vm5, %v680_v27  ;;  %v826_v60 = vsub.f32 1.0, %v825_v59  ;;  %v1145_v27 = vld [vmem:[%s1420_s6] ss:$0 sm:$0xff] }
 0x2ae   : > { %953 = vmatpush.bf16.msra.mxu3 %v1115_v25 }
 0x2af   : > { %v827_v61 = vmul.f32 %v1166_v58, %v826_v60 }
 0x2b1   : > { %v828_v62 = vadd.f32 %v1166_v58, %v827_v61  ;;  %v1147_v61 = vld [vmem:[%s1425_s11] ss:$0 sm:$0xff] }
 0x2b2   : > { %954 = vmatpush.bf16.msra.mxu3 %v1114_v26 }
 0x2b3   : > { %v1360_v63 = vsel %vm829_vm10, %v1166_v58, %v828_v62 }
 0x2b4   : > { %v553_v30 = vld [vmem:[#allocation2 + $0x2c] sm:$0xf] }
 0x2b5   : > { %v557_v32 = vpack.c.bf16 %v553_v30, %v553_v30 }
 0x2b7   : > { %v747_v33 = vsel %vm688_vm4, %v557_v32, 0 }
 0x2b8   : > { %756 = vmatpush.bf16.msra.mxu0 %v747_v33 }
 0x2bb   : > { %1070 = vmatmul.msk.bf16.vlgmr.msra.gmra.mxu0 %vm684_vm5, %v683_v34 }
 0x320   : > { %v720_v35 = vpop.f32.mrf.mxu2 }
 0x321   : > { %764 = vrot.lane.b32.xlu0 %v720_v35, %s1192_s16 }
 0x328   : > { %v722_v36 = vpop.f32.mrf.mxu2  ;;  %v739_v37 = vpop.f32.mrf.mxu3 }
 0x329   : > { %770 = vrot.lane.b32.xlu0 %v739_v37, %s1193_s17  ;;  %s1053_s17 = sshll.u32 %s1429_s26, 2 }
 0x32a   : > { %v701_v38 = vpop.f32.mrf.mxu1  ;;  %s435_s22 = scalar_lea.vmem %s1427_s13, %s1053_s17 }
 0x32b   : > { %762 = vst.msk [vmem:[#allocation3] sm:$0xf] %vm476_vm1, %v701_v38 }
 0x330   : > { %v741_v39 = vpop.f32.mrf.mxu3 }
 0x332   : > { %v703_v40 = vpop.f32.mrf.mxu1 }
 0x338   : > { %v758_v41 = vpop.f32.mrf.mxu0 }
 0x339   : > { %776 = vrot.lane.b32.xlu0 %v758_v41, %s1194_s18  ;;  %v1146_v41 = vld [vmem:[%s1422_s8] ss:$0 sm:$0xff] }
 0x340   : > { %v760_v42 = vpop.f32.mrf.mxu0 }
 0x393   : > { %v765_v45 = vpop.permute.xlu0 %764 }
 0x394   : > { %768 = vst.msk [vmem:[#allocation3] sm:$0xf] %vm767_vm6, %v765_v45 }
 0x39b   : > { %v771_v46 = vpop.permute.xlu0 %770 }
 0x39c   : > { %774 = vst.msk [vmem:[#allocation3] sm:$0xf] %vm773_vm7, %v771_v46 }
 0x3ab   : > { %v777_v47 = vpop.permute.xlu0 %776 }
 0x3ac   : > { %780 = vst.msk [vmem:[#allocation3] sm:$0xf] %vm779_vm8, %v777_v47 }
 0x3b3   : > { %v781_v48 = vld [vmem:[#allocation3] sm:$0xf] }
 0x3b4   : > { %v782_v49 = vpack.c.bf16 %v781_v48, %v781_v48 }
 0x3b6   : > { %1079 = vmatmul.msk.bf16.vlgmr.msra.gmra.mxu1 %vm459_vm0, %v782_v49 }
 0x433   : > { %v815_v52 = vpop.f32.mrf.mxu1 }
 0x434   : > { %v816_v53 = vadd.f32 %v1142_v50, %v815_v52 }
 0x436   : > { %v819_v54 = vadd.f32 %v816_v53, %v438_v51 }
 0x438   : > { %v821_v55 = vsel %vm820_vm9, %v819_v54, 0.0 }
 0x439   : > { %822 = vadd.xlane.f32.xlu1 %v821_v55 }
 0x43b   : > { %v817_v56 = vpop.f32.mrf.mxu1 }
 0x4ac   : > { %v823_v0 = vpop.xlane.xlu1 %822 }
 0x4ad   : > { %v831_v2 = vmul.f32 %v1360_v63, %v823_v0 }
 0x4af   : > { %v832_v1 = vsub.f32 %v819_v54, %v831_v2 }
 0x4b1   : > { %v833_v3 = vmul.f32 %v832_v1, %v832_v1 }
 0x4b3   : > { %v834_v4 = vsel %vm820_vm9, %v833_v3, 0.0 }
 0x4b4   : > { %835 = vadd.xlane.f32.xlu0 %v834_v4 }
 0x527   : > { %v836_v8 = vpop.xlane.xlu0 %835 }
 0x528   : > { %v837_v9 = vmul.f32 %v836_v8, %v1360_v63 }
 0x52a   : > { %v838_v10 = vadd.f32 1e-05, %v837_v9 }
 0x52c   : > { %1167 = vrsqrt.f32 %v838_v10  ;;  %vm845_vm12 = vweird.f32 %v838_v10 }
 0x532   : > { %v1168_v11 = vpop.eup %1167 }
 0x533   : > { %v840_v12 = vmul.f32 %v1168_v11, %v838_v10  ;;  %vm846_vm11 = vweird.f32 %v1168_v11 }
 0x534   : > { %vm847_vm13 = vmor %vm845_vm12, %vm846_vm11 }
 0x535   : > { %v841_v13 = vmul.f32 %v1168_v11, %v840_v12 }
 0x537   : > { %v842_v14 = vmul.f32 0.5, %v841_v13 }
 0x539   : > { %v843_v15 = vsub.f32 1.5, %v842_v14 }
 0x53b   : > { %v844_v16 = vmul.f32 %v1168_v11, %v843_v15 }
 0x53d   : > { %v848_v18 = vsel %vm847_vm13, %v1168_v11, %v844_v16 }
 0x53e   : > { %v849_v20 = vmul.f32 %v848_v18, %v832_v1 }
 0x540   : > { %v854_v21 = vmul.f32 %v1143_v17, %v849_v20 }
 0x542   : > { %v859_v22 = vadd.f32 %v1144_v19, %v854_v21 }
 0x544   : > { %v860_v23 = vpack.c.bf16 %v859_v22, %v859_v22 }
 0x546   : > { %1088 = vmatmul.msk.bf16.vlgmr.msra.gmra.mxu2 %vm459_vm0, %v860_v23 }
 0x5c9   : > { %v893_v28 = vpop.f32.mrf.mxu2 }
 0x5ca   : > { %v894_v29 = vadd.f32 %v1145_v27, %v893_v28 }
 0x5cc   : > { %v897_v30 = vmul.f32 %v894_v29, %v894_v29 }
 0x5ce   : > { %v898_v31 = vmul.f32 %v897_v30, %v894_v29 }
 0x5d0   : > { %v899_v32 = vmul.f32 0.044715, %v898_v31 }
 0x5d1   : > { %v895_v33 = vpop.f32.mrf.mxu2 }
 0x5d2   : > { %v900_v34 = vadd.f32 %v899_v32, %v894_v29 }
 0x5d4   : > { %v901_v35 = vmul.f32 0.7978846, %v900_v34 }
 0x5d6   : > { %1169 = vtanh.f32 %v901_v35 }
 0x5dc   : > { %v1170_v36 = vpop.eup %1169 }
 0x5dd   : > { %v903_v37 = vadd.f32 1.0, %v1170_v36 }
 0x5df   : > { %v904_v38 = vmul.f32 0.5, %v903_v37 }
 0x5e1   : > { %v905_v39 = vmul.f32 %v904_v38, %v894_v29 }
 0x5e3   : > { %v906_v40 = vpack.c.bf16 %v905_v39, %v905_v39 }
 0x5e5   : > { %1105 = vmatmul.msk.bf16.vlgmr.msra.gmra.mxu3 %vm943_vm14, %v906_v40 }
 0x668   : > { %v956_v42 = vpop.f32.mrf.mxu3 }
 0x669   : > { %v957_v43 = vadd.f32 %v1146_v41, %v956_v42 }
 0x66b   : > { %v960_v44 = vadd.f32 %v957_v43, %v859_v22 }
 0x66d   : > { %v961_v45 = vsel %vm820_vm9, %v960_v44, 0.0 }
 0x66e   : > { %962 = vadd.xlane.f32.xlu1 %v961_v45 }
 0x670   : > { %v958_v46 = vpop.f32.mrf.mxu3 }
 0x6e1   : > { %v963_v47 = vpop.xlane.xlu1 %962 }
 0x6e2   : > { %v964_v48 = vmul.f32 %v963_v47, %v1360_v63 }
 0x6e4   : > { %v965_v49 = vsub.f32 %v960_v44, %v964_v48 }
 0x6e6   : > { %v966_v50 = vmul.f32 %v965_v49, %v965_v49 }
 0x6e8   : > { %v967_v51 = vsel %vm820_vm9, %v966_v50, 0.0 }
 0x6e9   : > { %968 = vadd.xlane.f32.xlu2 %v967_v51 }
 0x75c   : > { %v969_v52 = vpop.xlane.xlu2 %968 }
 0x75d   : > { %v970_v53 = vmul.f32 %v969_v52, %v1360_v63  ;;  %v1148_v63 = vld [vmem:[%s1426_s12] ss:$0 sm:$0xff] }
 0x75f   : > { %v971_v54 = vadd.f32 1e-05, %v970_v53 }
 0x761   : > { %1171 = vrsqrt.f32 %v971_v54  ;;  %vm978_vm0 = vweird.f32 %v971_v54 }
 0x767   : > { %v1172_v55 = vpop.eup %1171 }
 0x768   : > { %v973_v56 = vmul.f32 %v1172_v55, %v971_v54  ;;  %vm979_vm15 = vweird.f32 %v1172_v55 }
 0x769   : > { %vm980_vm1 = vmor %vm978_vm0, %vm979_vm15 }
 0x76a   : > { %v974_v57 = vmul.f32 %v1172_v55, %v973_v56 }
 0x76c   : > { %v975_v58 = vmul.f32 0.5, %v974_v57 }
 0x76e   : > { %v976_v59 = vsub.f32 1.5, %v975_v58 }
 0x770   : > { %v977_v60 = vmul.f32 %v1172_v55, %v976_v59 }
 0x772   : > { %v981_v62 = vsel %vm980_vm1, %v1172_v55, %v977_v60 }
 0x773   : > { %v982_v0 = vmul.f32 %v981_v62, %v965_v49 }
 0x775   : > { %v987_v2 = vmul.f32 %v1147_v61, %v982_v0 }
 0x777   : > { %v992_v1 = vadd.f32 %v1148_v63, %v987_v2 }
 0x779   : > { %993 = vst.msk [vmem:[%s435_s22] sm:$0xf] %vm820_vm9, %v992_v1 }
 0x77a PF: > { %s23_s25 = sadd.s32 1, %s1179_s25  }
 0x77b   : > { %p20_p4 = scmp.ge.s32.totalorder %s23_s25, 4  }
 0x77d   :  { %22 = sbr.rel (!%p20_p4) target bundleno = 1 (0x1), region = 113 }

</bundles_post_ra>
